<compile_context>
chip_gen: v7x
topology: tpu7x:2x2x1
jax: 0.10.0
libtpu: 0.0.40
codegen_flags: <defaults>
</compile_context>

<pallas_src>
import functools

import numpy as np
import jax
import jax.numpy as jnp
from jax.experimental import pallas as pl
from jax.experimental.pallas import tpu as pltpu


# ---------------------------------------------------------------------------
# Kernel 1: tiled conv matmul, tap (K) accumulation, BN-stats epilogue
# ---------------------------------------------------------------------------

def _conv_mm_kernel(x_ref, w_ref, o_ref, st_ref, acc_ref):
    k = pl.program_id(2)

    @pl.when(k == 0)
    def _():
        acc_ref[...] = jnp.zeros_like(acc_ref)

    acc_ref[...] += jnp.dot(x_ref[...], w_ref[...],
                            preferred_element_type=jnp.float32)

    @pl.when(k == pl.num_programs(2) - 1)
    def _():
        y = acc_ref[...]
        o_ref[...] = y
        st_ref[0:1, :] = jnp.sum(y, axis=0, keepdims=True)
        st_ref[1:2, :] = jnp.sum(y * y, axis=0, keepdims=True)


def _conv_branches_matmul(x_taps, w_taps, *, tm):
    nb, nk, m, cin = x_taps.shape
    cout = w_taps.shape[-1]
    m_tiles = m // tm
    return pl.pallas_call(
        _conv_mm_kernel,
        out_shape=(jax.ShapeDtypeStruct((nb, m, cout), jnp.float32),
                   jax.ShapeDtypeStruct((nb, m_tiles, 2, cout), jnp.float32)),
        grid=(nb, m_tiles, nk),
        in_specs=[
            pl.BlockSpec((None, None, tm, cin), lambda n, i, k: (n, k, i, 0)),
            pl.BlockSpec((None, None, cin, cout), lambda n, i, k: (n, k, 0, 0)),
        ],
        out_specs=(
            pl.BlockSpec((None, tm, cout), lambda n, i, k: (n, i, 0)),
            pl.BlockSpec((None, None, 2, cout), lambda n, i, k: (n, i, 0, 0)),
        ),
        scratch_shapes=[pltpu.VMEM((tm, cout), jnp.float32)],
        compiler_params=pltpu.CompilerParams(
            dimension_semantics=("parallel", "parallel", "arbitrary")),
    )(x_taps, w_taps)


# ---------------------------------------------------------------------------
# Kernel 2: fused BN+ReLU + branch sum (U) + global average pool
# ---------------------------------------------------------------------------

def _u_pool_kernel(y_ref, sc_ref, sh_ref, s_ref, acc_ref):
    j = pl.program_id(1)

    @pl.when(j == 0)
    def _():
        acc_ref[...] = jnp.zeros_like(acc_ref)

    y = y_ref[...]                                  # (nb, ts, lanes) f32
    sc = sc_ref[...][:, None, :]
    sh = sh_ref[...][:, None, :]
    u = jnp.sum(jnp.maximum(y * sc + sh, 0.0), axis=0)     # (ts, lanes)
    acc_ref[...] += jnp.sum(u, axis=0, keepdims=True)      # (1, lanes)

    @pl.when(j == pl.num_programs(1) - 1)
    def _():
        s_ref[...] = acc_ref[...]


def _u_pool(conv_p, scale_p, shift_p, *, ts):
    nb, b, rows, lanes = conv_p.shape
    sp = rows // ts
    return pl.pallas_call(
        _u_pool_kernel,
        out_shape=jax.ShapeDtypeStruct((b, 1, lanes), jnp.float32),
        grid=(b, sp),
        in_specs=[
            pl.BlockSpec((nb, None, ts, lanes), lambda i, j: (0, i, j, 0)),
            pl.BlockSpec((nb, lanes), lambda i, j: (0, 0)),
            pl.BlockSpec((nb, lanes), lambda i, j: (0, 0)),
        ],
        out_specs=pl.BlockSpec((None, 1, lanes), lambda i, j: (i, 0, 0)),
        scratch_shapes=[pltpu.VMEM((1, lanes), jnp.float32)],
        compiler_params=pltpu.CompilerParams(
            dimension_semantics=("parallel", "arbitrary")),
    )(conv_p, scale_p, shift_p)


# ---------------------------------------------------------------------------
# Kernel 3: fused fc1 -> BN -> ReLU -> fc2 -> softmax over branches
# ---------------------------------------------------------------------------

def _fc_att_kernel(s_ref, w1_ref, g1_ref, b1_ref, w2_ref, a_ref,
                   *, n_branches, cout):
    s = s_ref[...]                                                  # (B, C)
    z = jnp.dot(s, w1_ref[...], preferred_element_type=jnp.float32)  # (B, d)
    mu = jnp.mean(z, axis=0, keepdims=True)
    var = jnp.mean(jnp.square(z - mu), axis=0, keepdims=True)
    z = jnp.maximum((z - mu) * jax.lax.rsqrt(var + 1e-5) * g1_ref[...]
                    + b1_ref[...], 0.0)
    logits = jnp.dot(z, w2_ref[...],
                     preferred_element_type=jnp.float32)            # (B, M*C)
    cols = [logits[:, i * cout:(i + 1) * cout] for i in range(n_branches)]
    mmax = cols[0]
    for c in cols[1:]:
        mmax = jnp.maximum(mmax, c)
    exps = [jnp.exp(c - mmax) for c in cols]
    denom = exps[0]
    for e in exps[1:]:
        denom = denom + e
    inv = pl.reciprocal(denom, approx=True)
    a_ref[...] = jnp.concatenate([e * inv for e in exps], axis=1)


def _fc_attention(s, w1, g1, b1, w2, *, n_branches, cout):
    b = s.shape[0]
    d = w1.shape[-1]
    kern = functools.partial(_fc_att_kernel, n_branches=n_branches, cout=cout)
    return pl.pallas_call(
        kern,
        out_shape=jax.ShapeDtypeStruct((b, n_branches * cout), jnp.float32),
        in_specs=[pl.BlockSpec(memory_space=pltpu.MemorySpace.VMEM)] * 5,
        out_specs=pl.BlockSpec(memory_space=pltpu.MemorySpace.VMEM),
    )(s, w1, g1.reshape(1, d), b1.reshape(1, d), w2)


# ---------------------------------------------------------------------------
# Kernel 4: fused BN+ReLU + attention-weighted branch sum (V)
# ---------------------------------------------------------------------------

def _v_kernel(y_ref, sc_ref, sh_ref, a_ref, o_ref):
    y = y_ref[...]                                  # (nb, ts, lanes)
    sc = sc_ref[...][:, None, :]
    sh = sh_ref[...][:, None, :]
    att = a_ref[...][:, None, :]
    o_ref[...] = jnp.sum(jnp.maximum(y * sc + sh, 0.0) * att, axis=0)


def _v_combine(conv_p, scale_p, shift_p, att_p, *, ts):
    nb, b, rows, lanes = conv_p.shape
    sp = rows // ts
    return pl.pallas_call(
        _v_kernel,
        out_shape=jax.ShapeDtypeStruct((b, rows, lanes), jnp.float32),
        grid=(b, sp),
        in_specs=[
            pl.BlockSpec((nb, None, ts, lanes), lambda i, j: (0, i, j, 0)),
            pl.BlockSpec((nb, lanes), lambda i, j: (0, 0)),
            pl.BlockSpec((nb, lanes), lambda i, j: (0, 0)),
            pl.BlockSpec((None, nb, lanes), lambda i, j: (i, 0, 0)),
        ],
        out_specs=pl.BlockSpec((None, ts, lanes), lambda i, j: (i, j, 0)),
        compiler_params=pltpu.CompilerParams(
            dimension_semantics=("parallel", "parallel")),
    )(conv_p, scale_p, shift_p, att_p)


# ---------------------------------------------------------------------------
# JAX-side glue (index precompute, tiny reductions)
# ---------------------------------------------------------------------------

def _pick_tile(total, target):
    """Largest divisor of `total` that is a multiple of 8 and <= target."""
    best = None
    t = 8
    while t <= min(total, target):
        if total % t == 0:
            best = t
        t += 8
    return best if best is not None else total


def _build_conv_taps(x_nhwc, dilations):
    """Per-branch, per-tap shifted windows of the shared padded input."""
    b, h, w, c = x_nhwc.shape
    pmax = max(dilations)
    xp = jnp.pad(x_nhwc, ((0, 0), (pmax, pmax), (pmax, pmax), (0, 0)))
    branches = []
    for d in dilations:
        taps = []
        for ky in range(3):
            for kx in range(3):
                oy = pmax + d * (ky - 1)
                ox = pmax + d * (kx - 1)
                win = xp[:, oy:oy + h, ox:ox + w, :]
                taps.append(win.reshape(b * h * w, c))
        branches.append(jnp.stack(taps, axis=0))        # (9, M, C)
    return jnp.stack(branches, axis=0)                  # (nb, 9, M, C)


def _grouped_weight_to_dense_taps(w, groups):
    """(Cout, Cin//groups, 3, 3) grouped weight -> (9, Cin, Cout) dense
    block-diagonal per-tap matrices (exactly equivalent to groups=16 conv)."""
    cout, cin_g, kh, kw = w.shape
    cout_g = cout // groups
    cin = cin_g * groups
    wt = jnp.transpose(w.reshape(groups, cout_g, cin_g, kh, kw),
                       (3, 4, 0, 2, 1)).reshape(kh * kw, groups, cin_g, cout_g)
    dense = jnp.zeros((kh * kw, cin, cout), jnp.float32)
    for g in range(groups):
        dense = dense.at[:, g * cin_g:(g + 1) * cin_g,
                         g * cout_g:(g + 1) * cout_g].set(wt[:, g])
    return dense


# ---------------------------------------------------------------------------
# SKConv forward
# ---------------------------------------------------------------------------

def skconv_forward(x_nchw, params, *, groups, n_branches):
    x = jnp.transpose(x_nchw, (0, 2, 3, 1)).astype(jnp.float32)   # -> NHWC
    b, h, w, _ = x.shape
    cout = params['bn_gamma'].shape[-1]
    hw = h * w
    m_rows = b * hw
    dilations = [1 + i for i in range(n_branches)]

    # im2col taps + dense block-diagonal weights (bf16 MXU operands, f32 acc).
    x_taps = _build_conv_taps(x, dilations).astype(jnp.bfloat16)
    w_taps = jnp.stack(
        [_grouped_weight_to_dense_taps(wi, groups) for wi in params['conv_w']],
        axis=0).astype(jnp.bfloat16)

    tm = _pick_tile(m_rows, 256)
    conv_out, stats = _conv_branches_matmul(x_taps, w_taps, tm=tm)

    # Training-mode BatchNorm folded into per-channel scale / shift.
    ssum = jnp.sum(stats, axis=1)                        # (nb, 2, Cout)
    mean = ssum[:, 0, :] / m_rows
    var = jnp.maximum(ssum[:, 1, :] / m_rows - mean * mean, 0.0)
    scale = params['bn_gamma'] * jax.lax.rsqrt(var + 1e-5)
    shift = params['bn_beta'] - mean * scale

    # Lane packing: pack 128//C consecutive pixels into the lane dim.
    pack = 128 // cout if (128 % cout == 0 and hw % max(1, 128 // cout) == 0) else 1
    rows = hw // pack
    lanes = pack * cout
    conv_p = conv_out.reshape(n_branches, b, rows, lanes)
    scale_p = jnp.tile(scale, (1, pack))
    shift_p = jnp.tile(shift, (1, pack))
    ts = _pick_tile(rows, 512)

    # U = sum_i ReLU(BN(conv_i)); s = global average pool of U.
    s_sum = _u_pool(conv_p, scale_p, shift_p, ts=ts)     # (B, 1, lanes)
    s = s_sum.reshape(b, pack, cout).sum(axis=1) / float(hw)   # (B, Cout)

    # Attention weights a (softmax over branches, per batch & channel).
    att = _fc_attention(s, params['fc1_w'], params['bn1_gamma'],
                        params['bn1_beta'], params['fc2_w'],
                        n_branches=n_branches, cout=cout)       # (B, nb*Cout)
    att_p = jnp.tile(att.reshape(b, n_branches, cout), (1, 1, pack))

    # V = sum_i ReLU(BN(conv_i)) * a_i
    v_p = _v_combine(conv_p, scale_p, shift_p, att_p, ts=ts)    # (B, rows, lanes)
    v = v_p.reshape(b, h, w, cout)
    return jnp.transpose(v, (0, 3, 1, 2))                       # -> NCHW


# ---------------------------------------------------------------------------
# Deterministic parameter init (shapes match the PyTorch __init__, d = 4)
# ---------------------------------------------------------------------------

def init_params(key, in_channels, out_channels, *, groups=16, n_branches=3, d=4):
    cin_g = in_channels // groups
    ks = jax.random.split(key, 3 * n_branches + 4)
    it = iter(ks)
    conv_w, gam, bet = [], [], []
    for _ in range(n_branches):
        sc = 1.0 / np.sqrt(cin_g * 9)
        conv_w.append(sc * jax.random.normal(
            next(it), (out_channels, cin_g, 3, 3), jnp.float32))
        gam.append(1.0 + 0.1 * jax.random.normal(next(it), (out_channels,),
                                                 jnp.float32))
        bet.append(0.1 * jax.random.normal(next(it), (out_channels,),
                                           jnp.float32))
    w1 = (1.0 / np.sqrt(out_channels)) * jax.random.normal(
        next(it), (out_channels, d), jnp.float32)
    g1 = 1.0 + 0.1 * jax.random.normal(next(it), (d,), jnp.float32)
    b1 = 0.1 * jax.random.normal(next(it), (d,), jnp.float32)
    w2 = (1.0 / np.sqrt(d)) * jax.random.normal(
        next(it), (d, n_branches * out_channels), jnp.float32)
    return {
        'conv_w': conv_w,
        'bn_gamma': jnp.stack(gam), 'bn_beta': jnp.stack(bet),
        'fc1_w': w1, 'bn1_gamma': g1, 'bn1_beta': b1, 'fc2_w': w2,
    }


# ---------------------------------------------------------------------------

if __name__ == "__main__":
    key = jax.random.PRNGKey(0)
    kp, kx = jax.random.split(key)

    # groups=16 requires channel counts divisible by 16.
    in_channels, out_channels = 32, 32
    B, H, W = 2, 16, 16
    M_BRANCHES, GROUPS = 3, 16

    params = init_params(kp, in_channels, out_channels,
                         groups=GROUPS, n_branches=M_BRANCHES)
    x = jax.random.normal(kx, (B, in_channels, H, W), jnp.float32)   # NCHW

    fwd = jax.jit(lambda xx, pp: skconv_forward(
        xx, pp, groups=GROUPS, n_branches=M_BRANCHES))
    out = jax.block_until_ready(fwd(x, params))

    assert out.shape == (B, out_channels, H, W), out.shape
    assert bool(jnp.all(jnp.isfinite(out)))
    print("KERNEL_OK")
</pallas_src>

<mosaic_0001>
module attributes {stable_mosaic.version = 11 : i64} {
  func.func @_conv_mm_kernel(%arg0: i32, %arg1: i32, %arg2: i32, %arg3: memref<1x1x256x32xbf16, #tpu.memory_space<vmem>>, %arg4: memref<1x1x32x32xbf16, #tpu.memory_space<vmem>>, %arg5: memref<1x256x32xf32, #tpu.memory_space<vmem>>, %arg6: memref<1x1x2x32xf32, #tpu.memory_space<vmem>>, %arg7: memref<256x32xf32, #tpu.memory_space<vmem>>) attributes {dimension_semantics = [#tpu.dimension_semantics<parallel>, #tpu.dimension_semantics<parallel>, #tpu.dimension_semantics<arbitrary>], iteration_bounds = array<i64: 3, 2, 9>, scalar_prefetch = 0 : i64, scratch_operands = 1 : i64, tpu.core_type = #tpu.core_type<tc>, window_params = [{transform_indices = @transform_0, window_bounds = array<i64: 1, 1, 256, 32>}, {transform_indices = @transform_1, window_bounds = array<i64: 1, 1, 32, 32>}, {transform_indices = @transform_2, window_bounds = array<i64: 1, 256, 32>}, {transform_indices = @transform_3, window_bounds = array<i64: 1, 1, 2, 32>}]} {
    %c0_i32 = arith.constant 0 : i32
    %0 = arith.cmpi eq, %arg2, %c0_i32 : i32
    %1 = arith.extui %0 : i1 to i32
    %c0_i32_0 = arith.constant 0 : i32
    %2 = arith.cmpi ne, %1, %c0_i32_0 : i32
    scf.if %2 {
      %cst_13 = arith.constant 0.000000e+00 : f32
      %14 = vector.broadcast %cst_13 : f32 to vector<256x32xf32>
      %c0_14 = arith.constant 0 : index
      %c0_15 = arith.constant 0 : index
      %15 = vector.load %arg7[%c0_14, %c0_15] : memref<256x32xf32, #tpu.memory_space<vmem>>, vector<256x32xf32>
      tpu.vector_store %arg7[%c0_14, %c0_15], %14 {strides = array<i32>} : memref<256x32xf32, #tpu.memory_space<vmem>>, vector<256x32xf32>,
    } else {
    }
    %c0 = arith.constant 0 : index
    %c0_1 = arith.constant 0 : index
    %3 = vector.load %arg7[%c0, %c0_1] : memref<256x32xf32, #tpu.memory_space<vmem>>, vector<256x32xf32>
    %c0_2 = arith.constant 0 : index
    %c0_3 = arith.constant 0 : index
    %c0_4 = arith.constant 0 : index
    %c0_5 = arith.constant 0 : index
    %4 = vector.load %arg3[%c0_2, %c0_3, %c0_4, %c0_5] : memref<1x1x256x32xbf16, #tpu.memory_space<vmem>>, vector<1x1x256x32xbf16>
    %5 = vector.shape_cast %4 : vector<1x1x256x32xbf16> to vector<256x32xbf16>
    %c0_6 = arith.constant 0 : index
    %c0_7 = arith.constant 0 : index
    %c0_8 = arith.constant 0 : index
    %c0_9 = arith.constant 0 : index
    %6 = vector.load %arg4[%c0_6, %c0_7, %c0_8, %c0_9] : memref<1x1x32x32xbf16, #tpu.memory_space<vmem>>, vector<1x1x32x32xbf16>
    %7 = vector.shape_cast %6 : vector<1x1x32x32xbf16> to vector<32x32xbf16>
    %cst = arith.constant dense<0.000000e+00> : vector<256x32xf32>
    %8 = tpu.matmul %5, %7, %cst {dimension_numbers = #tpu.dot_dimension_numbers<[1], [0], [0], [1], [0, 0, 1, 1], [], []>} : vector<256x32xbf16>, vector<32x32xbf16>, vector<256x32xf32> -> vector<256x32xf32>
    %9 = arith.addf %3, %8 : vector<256x32xf32>
    %c0_10 = arith.constant 0 : index
    %c0_11 = arith.constant 0 : index
    %10 = vector.load %arg7[%c0_10, %c0_11] : memref<256x32xf32, #tpu.memory_space<vmem>>, vector<256x32xf32>
    tpu.vector_store %arg7[%c0_10, %c0_11], %9 {strides = array<i32>} : memref<256x32xf32, #tpu.memory_space<vmem>>, vector<256x32xf32>,
    %c8_i32 = arith.constant 8 : i32
    %11 = arith.cmpi eq, %arg2, %c8_i32 : i32
    %12 = arith.extui %11 : i1 to i32
    %c0_i32_12 = arith.constant 0 : i32
    %13 = arith.cmpi ne, %12, %c0_i32_12 : i32
    scf.if %13 {
      %c0_13 = arith.constant 0 : index
      %c0_14 = arith.constant 0 : index
      %14 = vector.load %arg7[%c0_13, %c0_14] : memref<256x32xf32, #tpu.memory_space<vmem>>, vector<256x32xf32>
      %c0_15 = arith.constant 0 : index
      %c0_16 = arith.constant 0 : index
      %c0_17 = arith.constant 0 : index
      %15 = vector.load %arg5[%c0_15, %c0_16, %c0_17] : memref<1x256x32xf32, #tpu.memory_space<vmem>>, vector<1x256x32xf32>
      %16 = vector.shape_cast %15 : vector<1x256x32xf32> to vector<256x32xf32>
      %17 = vector.shape_cast %14 : vector<256x32xf32> to vector<1x256x32xf32>
      tpu.vector_store %arg5[%c0_15, %c0_16, %c0_17], %17 {strides = array<i32>} : memref<1x256x32xf32, #tpu.memory_space<vmem>>, vector<1x256x32xf32>,
      %cst_18 = arith.constant dense<0.000000e+00> : vector<32xf32>
      %18 = vector.multi_reduction <add>, %14, %cst_18 [0] : vector<256x32xf32> to vector<32xf32>
      %19 = vector.shape_cast %18 : vector<32xf32> to vector<1x32xf32>
      %c0_19 = arith.constant 0 : index
      %c0_20 = arith.constant 0 : index
      %c0_21 = arith.constant 0 : index
      %c0_22 = arith.constant 0 : index
      %20 = vector.load %arg6[%c0_19, %c0_20, %c0_21, %c0_22] : memref<1x1x2x32xf32, #tpu.memory_space<vmem>>, vector<1x1x1x32xf32>
      %21 = vector.shape_cast %20 : vector<1x1x1x32xf32> to vector<1x32xf32>
      %22 = vector.shape_cast %19 : vector<1x32xf32> to vector<1x1x1x32xf32>
      tpu.vector_store %arg6[%c0_19, %c0_20, %c0_21, %c0_22], %22 {strides = array<i32>} : memref<1x1x2x32xf32, #tpu.memory_space<vmem>>, vector<1x1x1x32xf32>,
      %23 = arith.mulf %14, %14 : vector<256x32xf32>
      %cst_23 = arith.constant dense<0.000000e+00> : vector<32xf32>
      %24 = vector.multi_reduction <add>, %23, %cst_23 [0] : vector<256x32xf32> to vector<32xf32>
      %25 = vector.shape_cast %24 : vector<32xf32> to vector<1x32xf32>
      %c0_24 = arith.constant 0 : index
      %c0_25 = arith.constant 0 : index
      %c1 = arith.constant 1 : index
      %c0_26 = arith.constant 0 : index
      %26 = vector.load %arg6[%c0_24, %c0_25, %c1, %c0_26] : memref<1x1x2x32xf32, #tpu.memory_space<vmem>>, vector<1x1x1x32xf32>
      %27 = vector.shape_cast %26 : vector<1x1x1x32xf32> to vector<1x32xf32>
      %28 = vector.shape_cast %25 : vector<1x32xf32> to vector<1x1x1x32xf32>
      tpu.vector_store %arg6[%c0_24, %c0_25, %c1, %c0_26], %28 {strides = array<i32>} : memref<1x1x2x32xf32, #tpu.memory_space<vmem>>, vector<1x1x1x32xf32>,
    } else {
    }
    return
  }
  func.func @transform_0(%arg0: i32, %arg1: i32, %arg2: i32) -> (i32, i32, i32, i32) {
    %c0_i32 = arith.constant 0 : i32
    %c0_i32_0 = arith.constant 0 : i32
    return %arg0, %arg2, %arg1, %c0_i32 : i32, i32, i32, i32
  }
  func.func @transform_1(%arg0: i32, %arg1: i32, %arg2: i32) -> (i32, i32, i32, i32) {
    %c0_i32 = arith.constant 0 : i32
    %c0_i32_0 = arith.constant 0 : i32
    %c0_i32_1 = arith.constant 0 : i32
    return %arg0, %arg2, %c0_i32, %c0_i32_0 : i32, i32, i32, i32
  }
  func.func @transform_2(%arg0: i32, %arg1: i32, %arg2: i32) -> (i32, i32, i32) {
    %c0_i32 = arith.constant 0 : i32
    %c0_i32_0 = arith.constant 0 : i32
    return %arg0, %arg1, %c0_i32 : i32, i32, i32
  }
  func.func @transform_3(%arg0: i32, %arg1: i32, %arg2: i32) -> (i32, i32, i32, i32) {
    %c0_i32 = arith.constant 0 : i32
    %c0_i32_0 = arith.constant 0 : i32
    %c0_i32_1 = arith.constant 0 : i32
    return %arg0, %arg1, %c0_i32, %c0_i32_0 : i32, i32, i32, i32
  }
}

module attributes {stable_mosaic.version = 11 : i64} {
  func.func @_u_pool_kernel(%arg0: i32, %arg1: i32, %arg2: memref<3x1x64x128xf32, #tpu.memory_space<vmem>>, %arg3: memref<3x128xf32, #tpu.memory_space<vmem>>, %arg4: memref<3x128xf32, #tpu.memory_space<vmem>>, %arg5: memref<1x1x128xf32, #tpu.memory_space<vmem>>, %arg6: memref<1x128xf32, #tpu.memory_space<vmem>>) attributes {dimension_semantics = [#tpu.dimension_semantics<parallel>, #tpu.dimension_semantics<arbitrary>], iteration_bounds = array<i64: 2, 1>, scalar_prefetch = 0 : i64, scratch_operands = 1 : i64, tpu.core_type = #tpu.core_type<tc>, window_params = [{transform_indices = @transform_0, window_bounds = array<i64: 3, 1, 64, 128>}, {pipeline_mode = #tpu.pipeline_mode<synchronous>, transform_indices = @transform_1, window_bounds = array<i64: 3, 128>}, {pipeline_mode = #tpu.pipeline_mode<synchronous>, transform_indices = @transform_2, window_bounds = array<i64: 3, 128>}, {transform_indices = @transform_3, window_bounds = array<i64: 1, 1, 128>}]} {
    %c0_i32 = arith.constant 0 : i32
    %0 = arith.cmpi eq, %arg1, %c0_i32 : i32
    %1 = arith.extui %0 : i1 to i32
    %c0_i32_0 = arith.constant 0 : i32
    %2 = arith.cmpi ne, %1, %c0_i32_0 : i32
    scf.if %2 {
      %cst_16 = arith.constant 0.000000e+00 : f32
      %24 = vector.broadcast %cst_16 : f32 to vector<1x128xf32>
      %c0_17 = arith.constant 0 : index
      %c0_18 = arith.constant 0 : index
      %25 = vector.load %arg6[%c0_17, %c0_18] : memref<1x128xf32, #tpu.memory_space<vmem>>, vector<1x128xf32>
      tpu.vector_store %arg6[%c0_17, %c0_18], %24 {strides = array<i32>} : memref<1x128xf32, #tpu.memory_space<vmem>>, vector<1x128xf32>,
    } else {
    }
    %c0 = arith.constant 0 : index
    %c0_1 = arith.constant 0 : index
    %c0_2 = arith.constant 0 : index
    %c0_3 = arith.constant 0 : index
    %3 = vector.load %arg2[%c0, %c0_1, %c0_2, %c0_3] : memref<3x1x64x128xf32, #tpu.memory_space<vmem>>, vector<3x1x64x128xf32>
    %4 = vector.shape_cast %3 : vector<3x1x64x128xf32> to vector<3x64x128xf32>
    %c0_4 = arith.constant 0 : index
    %c0_5 = arith.constant 0 : index
    %5 = vector.load %arg3[%c0_4, %c0_5] : memref<3x128xf32, #tpu.memory_space<vmem>>, vector<3x128xf32>
    %6 = vector.shape_cast %5 : vector<3x128xf32> to vector<3x1x128xf32>
    %c0_6 = arith.constant 0 : index
    %c0_7 = arith.constant 0 : index
    %7 = vector.load %arg4[%c0_6, %c0_7] : memref<3x128xf32, #tpu.memory_space<vmem>>, vector<3x128xf32>
    %8 = vector.shape_cast %7 : vector<3x128xf32> to vector<3x1x128xf32>
    %9 = vector.broadcast %6 : vector<3x1x128xf32> to vector<3x64x128xf32>
    %10 = arith.mulf %4, %9 : vector<3x64x128xf32>
    %11 = vector.broadcast %8 : vector<3x1x128xf32> to vector<3x64x128xf32>
    %12 = arith.addf %10, %11 : vector<3x64x128xf32>
    %cst = arith.constant 0.000000e+00 : f32
    %13 = vector.broadcast %cst : f32 to vector<3x64x128xf32>
    %14 = arith.maximumf %12, %13 : vector<3x64x128xf32>
    %cst_8 = arith.constant dense<0.000000e+00> : vector<64x128xf32>
    %15 = vector.multi_reduction <add>, %14, %cst_8 [0] : vector<3x64x128xf32> to vector<64x128xf32>
    %c0_9 = arith.constant 0 : index
    %c0_10 = arith.constant 0 : index
    %16 = vector.load %arg6[%c0_9, %c0_10] : memref<1x128xf32, #tpu.memory_space<vmem>>, vector<1x128xf32>
    %cst_11 = arith.constant dense<0.000000e+00> : vector<128xf32>
    %17 = vector.multi_reduction <add>, %15, %cst_11 [0] : vector<64x128xf32> to vector<128xf32>
    %18 = vector.shape_cast %17 : vector<128xf32> to vector<1x128xf32>
    %19 = arith.addf %16, %18 : vector<1x128xf32>
    %c0_12 = arith.constant 0 : index
    %c0_13 = arith.constant 0 : index
    %20 = vector.load %arg6[%c0_12, %c0_13] : memref<1x128xf32, #tpu.memory_space<vmem>>, vector<1x128xf32>
    tpu.vector_store %arg6[%c0_12, %c0_13], %19 {strides = array<i32>} : memref<1x128xf32, #tpu.memory_space<vmem>>, vector<1x128xf32>,
    %c0_i32_14 = arith.constant 0 : i32
    %21 = arith.cmpi eq, %arg1, %c0_i32_14 : i32
    %22 = arith.extui %21 : i1 to i32
    %c0_i32_15 = arith.constant 0 : i32
    %23 = arith.cmpi ne, %22, %c0_i32_15 : i32
    scf.if %23 {
      %c0_16 = arith.constant 0 : index
      %c0_17 = arith.constant 0 : index
      %24 = vector.load %arg6[%c0_16, %c0_17] : memref<1x128xf32, #tpu.memory_space<vmem>>, vector<1x128xf32>
      %c0_18 = arith.constant 0 : index
      %c0_19 = arith.constant 0 : index
      %c0_20 = arith.constant 0 : index
      %25 = vector.load %arg5[%c0_18, %c0_19, %c0_20] : memref<1x1x128xf32, #tpu.memory_space<vmem>>, vector<1x1x128xf32>
      %26 = vector.shape_cast %25 : vector<1x1x128xf32> to vector<1x128xf32>
      %27 = vector.shape_cast %24 : vector<1x128xf32> to vector<1x1x128xf32>
      tpu.vector_store %arg5[%c0_18, %c0_19, %c0_20], %27 {strides = array<i32>} : memref<1x1x128xf32, #tpu.memory_space<vmem>>, vector<1x1x128xf32>,
    } else {
    }
    return
  }
  func.func @transform_0(%arg0: i32, %arg1: i32) -> (i32, i32, i32, i32) {
    %c0_i32 = arith.constant 0 : i32
    %c0_i32_0 = arith.constant 0 : i32
    %c0_i32_1 = arith.constant 0 : i32
    return %c0_i32, %arg0, %arg1, %c0_i32_0 : i32, i32, i32, i32
  }
  func.func @transform_1(%arg0: i32, %arg1: i32) -> (i32, i32) {
    %c0_i32 = arith.constant 0 : i32
    %c0_i32_0 = arith.constant 0 : i32
    %c0_i32_1 = arith.constant 0 : i32
    return %c0_i32, %c0_i32_0 : i32, i32
  }
  func.func @transform_2(%arg0: i32, %arg1: i32) -> (i32, i32) {
    %c0_i32 = arith.constant 0 : i32
    %c0_i32_0 = arith.constant 0 : i32
    %c0_i32_1 = arith.constant 0 : i32
    return %c0_i32, %c0_i32_0 : i32, i32
  }
  func.func @transform_3(%arg0: i32, %arg1: i32) -> (i32, i32, i32) {
    %c0_i32 = arith.constant 0 : i32
    %c0_i32_0 = arith.constant 0 : i32
    %c0_i32_1 = arith.constant 0 : i32
    return %arg0, %c0_i32, %c0_i32_0 : i32, i32, i32
  }
}

module attributes {stable_mosaic.version = 11 : i64} {
  func.func @_fc_att_kernel(%arg0: memref<2x32xf32, #tpu.memory_space<vmem>>, %arg1: memref<32x4xf32, #tpu.memory_space<vmem>>, %arg2: memref<1x4xf32, #tpu.memory_space<vmem>>, %arg3: memref<1x4xf32, #tpu.memory_space<vmem>>, %arg4: memref<4x96xf32, #tpu.memory_space<vmem>>, %arg5: memref<2x96xf32, #tpu.memory_space<vmem>>) attributes {dimension_semantics = [], scalar_prefetch = 0 : i64, scratch_operands = 0 : i64, tpu.core_type = #tpu.core_type<tc>} {
    %c0 = arith.constant 0 : index
    %c0_0 = arith.constant 0 : index
    %0 = vector.load %arg0[%c0, %c0_0] : memref<2x32xf32, #tpu.memory_space<vmem>>, vector<2x32xf32>
    %c0_1 = arith.constant 0 : index
    %c0_2 = arith.constant 0 : index
    %1 = vector.load %arg1[%c0_1, %c0_2] : memref<32x4xf32, #tpu.memory_space<vmem>>, vector<32x4xf32>
    %cst = arith.constant dense<0.000000e+00> : vector<2x4xf32>
    %2 = tpu.matmul %0, %1, %cst {dimension_numbers = #tpu.dot_dimension_numbers<[1], [0], [0], [1], [0, 0, 1, 1], [], []>} : vector<2x32xf32>, vector<32x4xf32>, vector<2x4xf32> -> vector<2x4xf32>
    %cst_3 = arith.constant dense<0.000000e+00> : vector<4xf32>
    %3 = vector.multi_reduction <add>, %2, %cst_3 [0] : vector<2x4xf32> to vector<4xf32>
    %4 = vector.shape_cast %3 : vector<4xf32> to vector<1x4xf32>
    %cst_4 = arith.constant 2.000000e+00 : f32
    %5 = vector.broadcast %cst_4 : f32 to vector<1x4xf32>
    %6 = arith.divf %4, %5 : vector<1x4xf32>
    %7 = vector.broadcast %6 : vector<1x4xf32> to vector<2x4xf32>
    %8 = arith.subf %2, %7 : vector<2x4xf32>
    %9 = arith.mulf %8, %8 : vector<2x4xf32>
    %cst_5 = arith.constant dense<0.000000e+00> : vector<4xf32>
    %10 = vector.multi_reduction <add>, %9, %cst_5 [0] : vector<2x4xf32> to vector<4xf32>
    %11 = vector.shape_cast %10 : vector<4xf32> to vector<1x4xf32>
    %cst_6 = arith.constant 2.000000e+00 : f32
    %12 = vector.broadcast %cst_6 : f32 to vector<1x4xf32>
    %13 = arith.divf %11, %12 : vector<1x4xf32>
    %14 = vector.broadcast %6 : vector<1x4xf32> to vector<2x4xf32>
    %15 = arith.subf %2, %14 : vector<2x4xf32>
    %cst_7 = arith.constant 9.99999974E-6 : f32
    %16 = vector.broadcast %cst_7 : f32 to vector<1x4xf32>
    %17 = arith.addf %13, %16 : vector<1x4xf32>
    %18 = math.rsqrt %17 : vector<1x4xf32>
    %19 = vector.broadcast %18 : vector<1x4xf32> to vector<2x4xf32>
    %20 = arith.mulf %15, %19 : vector<2x4xf32>
    %c0_8 = arith.constant 0 : index
    %c0_9 = arith.constant 0 : index
    %21 = vector.load %arg2[%c0_8, %c0_9] : memref<1x4xf32, #tpu.memory_space<vmem>>, vector<1x4xf32>
    %22 = vector.broadcast %21 : vector<1x4xf32> to vector<2x4xf32>
    %23 = arith.mulf %20, %22 : vector<2x4xf32>
    %c0_10 = arith.constant 0 : index
    %c0_11 = arith.constant 0 : index
    %24 = vector.load %arg3[%c0_10, %c0_11] : memref<1x4xf32, #tpu.memory_space<vmem>>, vector<1x4xf32>
    %25 = vector.broadcast %24 : vector<1x4xf32> to vector<2x4xf32>
    %26 = arith.addf %23, %25 : vector<2x4xf32>
    %cst_12 = arith.constant 0.000000e+00 : f32
    %27 = vector.broadcast %cst_12 : f32 to vector<2x4xf32>
    %28 = arith.maximumf %26, %27 : vector<2x4xf32>
    %c0_13 = arith.constant 0 : index
    %c0_14 = arith.constant 0 : index
    %29 = vector.load %arg4[%c0_13, %c0_14] : memref<4x96xf32, #tpu.memory_space<vmem>>, vector<4x96xf32>
    %cst_15 = arith.constant dense<0.000000e+00> : vector<2x96xf32>
    %30 = tpu.matmul %28, %29, %cst_15 {dimension_numbers = #tpu.dot_dimension_numbers<[1], [0], [0], [1], [0, 0, 1, 1], [], []>} : vector<2x4xf32>, vector<4x96xf32>, vector<2x96xf32> -> vector<2x96xf32>
    %31 = vector.extract_strided_slice %30 {offsets = [0, 0], sizes = [2, 32], strides = [1, 1]} : vector<2x96xf32> to vector<2x32xf32>
    %32 = vector.extract_strided_slice %30 {offsets = [0, 32], sizes = [2, 32], strides = [1, 1]} : vector<2x96xf32> to vector<2x32xf32>
    %33 = vector.extract_strided_slice %30 {offsets = [0, 64], sizes = [2, 32], strides = [1, 1]} : vector<2x96xf32> to vector<2x32xf32>
    %34 = arith.maximumf %31, %32 : vector<2x32xf32>
    %35 = arith.maximumf %34, %33 : vector<2x32xf32>
    %36 = arith.subf %31, %35 : vector<2x32xf32>
    %37 = math.exp %36 : vector<2x32xf32>
    %38 = arith.subf %32, %35 : vector<2x32xf32>
    %39 = math.exp %38 : vector<2x32xf32>
    %40 = arith.subf %33, %35 : vector<2x32xf32>
    %41 = math.exp %40 : vector<2x32xf32>
    %42 = arith.addf %37, %39 : vector<2x32xf32>
    %43 = arith.addf %42, %41 : vector<2x32xf32>
    %44 = tpu.reciprocal %43 {approx = true} : vector<2x32xf32> -> vector<2x32xf32>
    %45 = arith.mulf %37, %44 : vector<2x32xf32>
    %46 = arith.mulf %39, %44 : vector<2x32xf32>
    %47 = arith.mulf %41, %44 : vector<2x32xf32>
    %48 = tpu.concatenate %45, %46, %47 in 1 : vector<2x32xf32>, vector<2x32xf32>, vector<2x32xf32> -> vector<2x96xf32>
    %c0_16 = arith.constant 0 : index
    %c0_17 = arith.constant 0 : index
    %49 = vector.load %arg5[%c0_16, %c0_17] : memref<2x96xf32, #tpu.memory_space<vmem>>, vector<2x96xf32>
    tpu.vector_store %arg5[%c0_16, %c0_17], %48 {strides = array<i32>} : memref<2x96xf32, #tpu.memory_space<vmem>>, vector<2x96xf32>,
    return
  }
}

module attributes {stable_mosaic.version = 11 : i64} {
  func.func @_v_kernel(%arg0: i32, %arg1: i32, %arg2: memref<3x1x64x128xf32, #tpu.memory_space<vmem>>, %arg3: memref<3x128xf32, #tpu.memory_space<vmem>>, %arg4: memref<3x128xf32, #tpu.memory_space<vmem>>, %arg5: memref<1x3x128xf32, #tpu.memory_space<vmem>>, %arg6: memref<1x64x128xf32, #tpu.memory_space<vmem>>) attributes {dimension_semantics = [#tpu.dimension_semantics<parallel>, #tpu.dimension_semantics<parallel>], iteration_bounds = array<i64: 2, 1>, scalar_prefetch = 0 : i64, scratch_operands = 0 : i64, tpu.core_type = #tpu.core_type<tc>, window_params = [{transform_indices = @transform_0, window_bounds = array<i64: 3, 1, 64, 128>}, {pipeline_mode = #tpu.pipeline_mode<synchronous>, transform_indices = @transform_1, window_bounds = array<i64: 3, 128>}, {pipeline_mode = #tpu.pipeline_mode<synchronous>, transform_indices = @transform_2, window_bounds = array<i64: 3, 128>}, {transform_indices = @transform_3, window_bounds = array<i64: 1, 3, 128>}, {transform_indices = @transform_4, window_bounds = array<i64: 1, 64, 128>}]} {
    %c0 = arith.constant 0 : index
    %c0_0 = arith.constant 0 : index
    %c0_1 = arith.constant 0 : index
    %c0_2 = arith.constant 0 : index
    %0 = vector.load %arg2[%c0, %c0_0, %c0_1, %c0_2] : memref<3x1x64x128xf32, #tpu.memory_space<vmem>>, vector<3x1x64x128xf32>
    %1 = vector.shape_cast %0 : vector<3x1x64x128xf32> to vector<3x64x128xf32>
    %c0_3 = arith.constant 0 : index
    %c0_4 = arith.constant 0 : index
    %2 = vector.load %arg3[%c0_3, %c0_4] : memref<3x128xf32, #tpu.memory_space<vmem>>, vector<3x128xf32>
    %3 = vector.shape_cast %2 : vector<3x128xf32> to vector<3x1x128xf32>
    %c0_5 = arith.constant 0 : index
    %c0_6 = arith.constant 0 : index
    %4 = vector.load %arg4[%c0_5, %c0_6] : memref<3x128xf32, #tpu.memory_space<vmem>>, vector<3x128xf32>
    %5 = vector.shape_cast %4 : vector<3x128xf32> to vector<3x1x128xf32>
    %c0_7 = arith.constant 0 : index
    %c0_8 = arith.constant 0 : index
    %c0_9 = arith.constant 0 : index
    %6 = vector.load %arg5[%c0_7, %c0_8, %c0_9] : memref<1x3x128xf32, #tpu.memory_space<vmem>>, vector<1x3x128xf32>
    %7 = vector.shape_cast %6 : vector<1x3x128xf32> to vector<3x128xf32>
    %8 = vector.shape_cast %7 : vector<3x128xf32> to vector<3x1x128xf32>
    %9 = vector.broadcast %3 : vector<3x1x128xf32> to vector<3x64x128xf32>
    %10 = arith.mulf %1, %9 : vector<3x64x128xf32>
    %11 = vector.broadcast %5 : vector<3x1x128xf32> to vector<3x64x128xf32>
    %12 = arith.addf %10, %11 : vector<3x64x128xf32>
    %cst = arith.constant 0.000000e+00 : f32
    %13 = vector.broadcast %cst : f32 to vector<3x64x128xf32>
    %14 = arith.maximumf %12, %13 : vector<3x64x128xf32>
    %15 = vector.broadcast %8 : vector<3x1x128xf32> to vector<3x64x128xf32>
    %16 = arith.mulf %14, %15 : vector<3x64x128xf32>
    %cst_10 = arith.constant dense<0.000000e+00> : vector<64x128xf32>
    %17 = vector.multi_reduction <add>, %16, %cst_10 [0] : vector<3x64x128xf32> to vector<64x128xf32>
    %c0_11 = arith.constant 0 : index
    %c0_12 = arith.constant 0 : index
    %c0_13 = arith.constant 0 : index
    %18 = vector.load %arg6[%c0_11, %c0_12, %c0_13] : memref<1x64x128xf32, #tpu.memory_space<vmem>>, vector<1x64x128xf32>
    %19 = vector.shape_cast %18 : vector<1x64x128xf32> to vector<64x128xf32>
    %20 = vector.shape_cast %17 : vector<64x128xf32> to vector<1x64x128xf32>
    tpu.vector_store %arg6[%c0_11, %c0_12, %c0_13], %20 {strides = array<i32>} : memref<1x64x128xf32, #tpu.memory_space<vmem>>, vector<1x64x128xf32>,
    return
  }
  func.func @transform_0(%arg0: i32, %arg1: i32) -> (i32, i32, i32, i32) {
    %c0_i32 = arith.constant 0 : i32
    %c0_i32_0 = arith.constant 0 : i32
    %c0_i32_1 = arith.constant 0 : i32
    return %c0_i32, %arg0, %arg1, %c0_i32_0 : i32, i32, i32, i32
  }
  func.func @transform_1(%arg0: i32, %arg1: i32) -> (i32, i32) {
    %c0_i32 = arith.constant 0 : i32
    %c0_i32_0 = arith.constant 0 : i32
    %c0_i32_1 = arith.constant 0 : i32
    return %c0_i32, %c0_i32_0 : i32, i32
  }
  func.func @transform_2(%arg0: i32, %arg1: i32) -> (i32, i32) {
    %c0_i32 = arith.constant 0 : i32
    %c0_i32_0 = arith.constant 0 : i32
    %c0_i32_1 = arith.constant 0 : i32
    return %c0_i32, %c0_i32_0 : i32, i32
  }
  func.func @transform_3(%arg0: i32, %arg1: i32) -> (i32, i32, i32) {
    %c0_i32 = arith.constant 0 : i32
    %c0_i32_0 = arith.constant 0 : i32
    %c0_i32_1 = arith.constant 0 : i32
    return %arg0, %c0_i32, %c0_i32_0 : i32, i32, i32
  }
  func.func @transform_4(%arg0: i32, %arg1: i32) -> (i32, i32, i32) {
    %c0_i32 = arith.constant 0 : i32
    %c0_i32_0 = arith.constant 0 : i32
    return %arg0, %arg1, %c0_i32 : i32, i32, i32
  }
}

</mosaic_0001>

<bundles_post_ra>
// kernel: tile.18
= control target key start
LH: loop header
LB: loop body
LE: loop exit
PB: predicated region body
PF: predicated region fallthrough
CT: control target
= control target key end

     0   :  { %vm16_vm0 = vcmask 261120   ;;  %s49_s12 = smov 32   ;;  %s50_s13 = smov 64   ;;  %vm22_vm1 = vcmask 1048320   ;;  %vm28_vm2 = vcmask 785920   ;;  %vm34_vm3 = vcmask 523520   ;;  %s73_s0 = inlined_call_operand.vmem [shape: f32[3,4,32], index: 0, kind: input, shape index: {}]   ;;  %s74_s1 = inlined_call_operand.vmem [shape: f32[3,128], index: 1, kind: output, shape index: {}]  }
   0x1   :  { %v43_v0 = vld [vmem:[%s73_s0 + $0x8] sm:$0xf]  ;;  %v44_v1 = vld [vmem:[%s73_s0 + $0x4] sm:$0xf]  ;;  %v13_v2 = vld [vmem:[%s73_s0] sm:$0xf] }
   0x2   :  { %8 = vst [vmem:[#allocation1 + $0x10] sm:$0xf] %v43_v0  ;;  %12 = vst [vmem:[#allocation1 + $0x8] sm:$0xf] %v44_v1  ;;  %s48_s0 = smov 96  }
   0x3   :  { %14 = vst [vmem:[#allocation1] sm:$0xf] %v13_v2 }
   0xa   :  { %v19_v3 = vld [vmem:[#allocation1 + $0x3] ss:$8 sm:$0x7]   ;;  %v31_v4 = vld [vmem:[#allocation1 + $0x1] ss:$8 sm:$0x7]  }
   0xb   :  { %20 = vrot.lane.b32.xlu0 %v19_v3, %s48_s0  ;;  %v15_v5 = vld [vmem:[#allocation1] ss:$8 sm:$0x7]   ;;  %v25_v6 = vld [vmem:[#allocation1 + $0x2] ss:$8 sm:$0x7]   ;;  %32 = vrot.lane.b32.xlu1 %v31_v4, %s49_s12 }
   0xc   :  { %17 = vst.msk [vmem:[#allocation0] sm:$0x7] %vm16_vm0, %v15_v5  }
   0xf   :  { %26 = vrot.lane.b32.xlu0 %v25_v6, %s50_s13 }
  0x7d   :  { %v21_v7 = vpop.permute.xlu0 %20   ;;  %v33_v8 = vpop.permute.xlu1 %32  }
  0x7e   :  { %23 = vst.msk [vmem:[#allocation0] sm:$0x7] %vm22_vm1, %v21_v7  }
  0x81   :  { %v27_v9 = vpop.permute.xlu0 %26  }
  0x82   :  { %29 = vst.msk [vmem:[#allocation0] sm:$0x7] %vm28_vm2, %v27_v9  }
  0x83   :  { %35 = vst.msk [vmem:[#allocation0] sm:$0x7] %vm34_vm3, %v33_v8  }
  0x8a   :  { %v39_v10 = vld [vmem:[#allocation0] sm:$0xf] }
  0x8b   :  { %41 = vst [vmem:[%s74_s1] sm:$0xf] %v39_v10 }

// kernel: _lambda_.5
= control target key start
LH: loop header
LB: loop body
LE: loop exit
PB: predicated region body
PF: predicated region fallthrough
CT: control target
= control target key end

     0   :  { %s711_s12 = smov 0   ;;  %s713_s13 = smov 0   ;;  %s861_s0 = inlined_call_operand.vmem [shape: f32[3,2,64,128], index: 0, kind: input, shape index: {}]   ;;  %s862_s1 = inlined_call_operand.vmem [shape: f32[3,128], index: 1, kind: input, shape index: {}]   ;;  %s863_s2 = inlined_call_operand.vmem [shape: f32[3,128], index: 2, kind: input, shape index: {}]   ;;  %s864_s3 = inlined_call_operand.vmem [shape: f32[2,1,128], index: 3, kind: output, shape index: {}]  }
   0x1   :  { %s715_s14 = smov 0   ;;  %s717_s15 = smov 0  }
   0x2   :  { %s719_s16 = smov 0  }
   0x3 LB: > { %s25_s17 = sadd.s32 1, %s683_s15  ;;  %p41_p1 = scmp.ne.s32.totalorder %s675_s13, %s671_s12  ;;  %s687_s16 = sphi %s719_s16, %s13_s16   ;;  %s683_s15 = sphi %s717_s15, %s868_s15   ;;  %s679_s14 = sphi %s715_s14, %s867_s14   ;;  %s675_s13 = sphi %s713_s13, %s866_s13   ;;  %s671_s12 = sphi %s711_s12, %s865_s12  }
   0x4   : > { %p27_p0 = scmp.ge.s32.totalorder %s25_s17, 2  ;;  %p42_p2 = scmp.eq.s32.totalorder %s687_s16, 0 }
   0x5   : > { %s34_s19 = sadd.s32 1, %s675_s13  ;;  %p596_p5 = scmp.ge.s32.totalorder %s687_s16, 2 }
   0x6   : > { %s870_s17 = smov (%p27_p0, %s25_s17), 0  ;;  %p43_p3 = por %p42_p2, %p41_p1 }
   0x7   : > { %s29_s18 = ssub.s32 %s683_s15, %s870_s17  ;;  %141 = sbr.rel (%p596_p5) target bundleno = 31 (0x1f), region = 24 }
   0x8   : > { %p32_p4 = scmp.eq.s32.totalorder %s29_s18, 0 }
   0xa   : > { %s746_s20 = scalar_select %p32_p4, %s675_s13, %s34_s19  }
   0xe   : > { %144 = sbr.rel (!%p43_p3) target bundleno = 31 (0x1f), region = 28  ;;  %s146_s21 = sand.u32 (%p43_p3), 1, %s675_s13  }
   0xf   : > { %s604_s22 = sshll.u32 (%p43_p3), %s683_s15, 6  ;;  %s605_s23 = smul.u32 (%p43_p3), 192, %s146_s21 }
  0x10   : > { %s754_s26 = scalar_lea.vmem (%p43_p3), %s861_s0, %s604_s22 }
  0x11   : > { %v227_v0 = vld [vmem:[%s754_s26] sm:$0xff] (%p43_p3)  ;;  %v229_v1 = vld [vmem:[%s754_s26 + $0x8] sm:$0xff] (%p43_p3)  ;;  %v231_v2 = vld [vmem:[%s754_s26 + $0x10] sm:$0xff] (%p43_p3)  ;;  %s762_s27 = scalar_lea.vmem (%p43_p3), [#allocation3], %s605_s23 }
  0x12   : > { %v233_v3 = vld [vmem:[%s754_s26 + $0x18] sm:$0xff] (%p43_p3)  ;;  %v235_v4 = vld [vmem:[%s754_s26 + $0x20] sm:$0xff] (%p43_p3)  ;;  %v237_v5 = vld [vmem:[%s754_s26 + $0x28] sm:$0xff] (%p43_p3)  ;;  %228 = vst [vmem:[%s762_s27] sm:$0xff] (%p43_p3), %v227_v0 }
  0x13   : > { %230 = vst [vmem:[%s762_s27 + $0x8] sm:$0xff] (%p43_p3), %v229_v1  ;;  %232 = vst [vmem:[%s762_s27 + $0x10] sm:$0xff] (%p43_p3), %v231_v2  ;;  %v239_v6 = vld [vmem:[%s754_s26 + $0x30] sm:$0xff] (%p43_p3)  ;;  %v241_v7 = vld [vmem:[%s754_s26 + $0x38] sm:$0xff] (%p43_p3) }
  0x14   : > { %234 = vst [vmem:[%s762_s27 + $0x18] sm:$0xff] (%p43_p3), %v233_v3  ;;  %236 = vst [vmem:[%s762_s27 + $0x20] sm:$0xff] (%p43_p3), %v235_v4  ;;  %v243_v8 = vld [vmem:[%s754_s26 + $0x80] sm:$0xff] (%p43_p3)  ;;  %v245_v9 = vld [vmem:[%s754_s26 + $0x88] sm:$0xff] (%p43_p3) }
  0x15   : > { %238 = vst [vmem:[%s762_s27 + $0x28] sm:$0xff] %v237_v5  ;;  %240 = vst [vmem:[%s762_s27 + $0x30] sm:$0xff] %v239_v6  ;;  %v247_v10 = vld [vmem:[%s754_s26 + $0x90] sm:$0xff]  ;;  %v249_v11 = vld [vmem:[%s754_s26 + $0x98] sm:$0xff] }
  0x16   : > { %242 = vst [vmem:[%s762_s27 + $0x38] sm:$0xff] %v241_v7  ;;  %244 = vst [vmem:[%s762_s27 + $0x40] sm:$0xff] %v243_v8  ;;  %v251_v12 = vld [vmem:[%s754_s26 + $0xa0] sm:$0xff]  ;;  %v253_v13 = vld [vmem:[%s754_s26 + $0xa8] sm:$0xff] }
  0x17   : > { %246 = vst [vmem:[%s762_s27 + $0x48] sm:$0xff] %v245_v9  ;;  %248 = vst [vmem:[%s762_s27 + $0x50] sm:$0xff] %v247_v10  ;;  %v255_v14 = vld [vmem:[%s754_s26 + $0xb0] sm:$0xff]  ;;  %v257_v15 = vld [vmem:[%s754_s26 + $0xb8] sm:$0xff] }
  0x18   : > { %250 = vst [vmem:[%s762_s27 + $0x58] sm:$0xff] %v249_v11  ;;  %252 = vst [vmem:[%s762_s27 + $0x60] sm:$0xff] %v251_v12  ;;  %v259_v16 = vld [vmem:[%s754_s26 + $0x100] sm:$0xff]  ;;  %v261_v17 = vld [vmem:[%s754_s26 + $0x108] sm:$0xff] }
  0x19   : > { %254 = vst [vmem:[%s762_s27 + $0x68] sm:$0xff] %v253_v13  ;;  %256 = vst [vmem:[%s762_s27 + $0x70] sm:$0xff] %v255_v14  ;;  %v263_v18 = vld [vmem:[%s754_s26 + $0x110] sm:$0xff]  ;;  %v265_v19 = vld [vmem:[%s754_s26 + $0x118] sm:$0xff] }
  0x1a   : > { %258 = vst [vmem:[%s762_s27 + $0x78] sm:$0xff] %v257_v15  ;;  %260 = vst [vmem:[%s762_s27 + $0x80] sm:$0xff] %v259_v16  ;;  %v267_v20 = vld [vmem:[%s754_s26 + $0x120] sm:$0xff]  ;;  %v269_v21 = vld [vmem:[%s754_s26 + $0x128] sm:$0xff] }
  0x1b   : > { %262 = vst [vmem:[%s762_s27 + $0x88] sm:$0xff] %v261_v17  ;;  %264 = vst [vmem:[%s762_s27 + $0x90] sm:$0xff] %v263_v18  ;;  %v271_v22 = vld [vmem:[%s754_s26 + $0x130] sm:$0xff]  ;;  %v273_v23 = vld [vmem:[%s754_s26 + $0x138] sm:$0xff] }
  0x1c   : > { %266 = vst [vmem:[%s762_s27 + $0x98] sm:$0xff] %v265_v19  ;;  %268 = vst [vmem:[%s762_s27 + $0xa0] sm:$0xff] %v267_v20 }
  0x1d   : > { %270 = vst [vmem:[%s762_s27 + $0xa8] sm:$0xff] %v269_v21  ;;  %272 = vst [vmem:[%s762_s27 + $0xb0] sm:$0xff] %v271_v22 }
  0x1e   : > { %274 = vst [vmem:[%s762_s27 + $0xb8] sm:$0xff] %v273_v23 }
  0x1f PF: > { %p599_p6 = scmp.ge.s32.totalorder %s687_s16, 1  ;;  %p279_p7 = scmp.lt.s32.totalorder %s687_s16, 3 }
  0x21   : > { %p280_p8 = pnand %p599_p6, %p279_p7 }
  0x22   : > { %s286_s28 = sand.u32 (!%p280_p8), 1, %s671_s12   ;;  %v353_v24 = vlaneseq (!%p280_p8)  ;;  %v689_v25 = vmov (!%p280_p8), 0.0   ;;  %v600_v26 = vld.sshfl [vmem:[%s862_s1] sm:$0x13 pattern:$0x75316420] (!%p280_p8) }
  0x23   : > { %283 = sbr.rel (%p280_p8) target bundleno = 103 (0x67), region = 66  ;;  %315 = vst [vmem:[#allocation2] sm:$0x1] (!%p280_p8), %v689_v25  ;;  %v690_v27 = vmov (!%p280_p8), 1966171168   ;;  %v349_v31 = vcombine.high (!%p280_p8), %v600_v26, %v600_v26  ;;  %p308_p9 = scmp.lt.s32.totalorder (!%p280_p8), %s679_s14, 1 }
  0x24   : > { %s606_s4 = smul.u32 (!%p280_p8), 192, %s286_s28  ;;  %v351_v28 = vunpack.c.l.s4 (!%p280_p8), %v690_v27  ;;  %v354_v29 = vshrl.u32 (!%p280_p8), %v353_v24, 7  ;;  %v601_v30 = vld.sshfl [vmem:[%s863_s2] sm:$0x13 pattern:$0x75316420] (!%p280_p8) }
  0x25   : > { %v374_v34 = vcombine.high (!%p280_p8), %v601_v30, %v601_v30 }
  0x26   : > { %v352_v32 = vunpack.c.0.s8 (!%p280_p8), %v351_v28  ;;  %v392_v35 = vsub.s32 (!%p280_p8), 0, %v354_v29  ;;  %s815_s7 = scalar_lea.vmem (!%p280_p8), [#allocation3], %s606_s4 }
  0x27   : > { %v316_v38 = vld [vmem:[%s815_s7] sm:$0xff] (!%p280_p8)  ;;  %v317_v40 = vld [vmem:[%s815_s7 + $0x8] sm:$0xff] (!%p280_p8)  ;;  %v318_v41 = vld [vmem:[%s815_s7 + $0x10] sm:$0xff] (!%p280_p8) }
  0x28   : > { %v355_v33 = vsub.s32 (!%p280_p8), %v352_v32, %v354_v29  ;;  %v319_v42 = vld [vmem:[%s815_s7 + $0x18] sm:$0xff] (!%p280_p8)  ;;  %v320_v46 = vld [vmem:[%s815_s7 + $0x20] sm:$0xff] (!%p280_p8)  ;;  %v321_v47 = vld [vmem:[%s815_s7 + $0x28] sm:$0xff] (!%p280_p8) }
  0x29   : > { %v322_v48 = vld [vmem:[%s815_s7 + $0x30] sm:$0xff] (!%p280_p8)  ;;  %v323_v49 = vld [vmem:[%s815_s7 + $0x38] sm:$0xff] (!%p280_p8)  ;;  %v324_v50 = vld [vmem:[%s815_s7 + $0x40] sm:$0xff] (!%p280_p8) }
  0x2a   : > { %v356_v36 = vrot.slane %v600_v26, %v355_v33  ;;  %v363_v37 = vrot.slane %v349_v31, %v355_v33  ;;  %v381_v39 = vrot.slane %v601_v30, %v355_v33  ;;  %v388_v44 = vrot.slane %v374_v34, %v355_v33  ;;  %v325_v51 = vld [vmem:[%s815_s7 + $0x48] sm:$0xff]  ;;  %v326_v53 = vld [vmem:[%s815_s7 + $0x50] sm:$0xff]  ;;  %v327_v54 = vld [vmem:[%s815_s7 + $0x58] sm:$0xff]  ;;  %s872_s14 = smov (!%p308_p9, %s679_s14), 1 }
  0x2b   : > { %v328_v55 = vld [vmem:[%s815_s7 + $0x60] sm:$0xff]  ;;  %v329_v58 = vld [vmem:[%s815_s7 + $0x68] sm:$0xff]  ;;  %v330_v59 = vld [vmem:[%s815_s7 + $0x70] sm:$0xff]  ;;  %s310_s10 = scalar_lea.vmem %s864_s3, %s872_s14 }
  0x2c   : > { %v364_v43 = vcombine.high %v356_v36, %v356_v36  ;;  %v393_v45 = vrot.slane %v356_v36, %v392_v35  ;;  %v397_v52 = vrot.slane %v363_v37, %v392_v35  ;;  %v389_v56 = vcombine.high %v381_v39, %v381_v39  ;;  %v331_v60 = vld [vmem:[%s815_s7 + $0x78] sm:$0xff]  ;;  %v332_v1 = vld [vmem:[%s815_s7 + $0x80] sm:$0xff]  ;;  %v333_v2 = vld [vmem:[%s815_s7 + $0x88] sm:$0xff] }
  0x2d   : > { %v432_v57 = vrot.slane %v381_v39, %v392_v35  ;;  %v436_v0 = vrot.slane %v388_v44, %v392_v35  ;;  %v334_v3 = vld [vmem:[%s815_s7 + $0x90] sm:$0xff]  ;;  %v335_v8 = vld [vmem:[%s815_s7 + $0x98] sm:$0xff]  ;;  %v336_v9 = vld [vmem:[%s815_s7 + $0xa0] sm:$0xff] }
  0x2e   : > { %v401_v61 = vrot.slane %v364_v43, %v392_v35  ;;  %v405_v62 = vmul.f32 %v393_v45, %v316_v38  ;;  %v406_v63 = vmul.f32 %v393_v45, %v317_v40  ;;  %v407_v4 = vmul.f32 %v393_v45, %v318_v41  ;;  %v337_v10 = vld [vmem:[%s815_s7 + $0xa8] sm:$0xff]  ;;  %v338_v15 = vld [vmem:[%s815_s7 + $0xb0] sm:$0xff]  ;;  %v339_v16 = vld [vmem:[%s815_s7 + $0xb8] sm:$0xff] }
  0x2f   : > { %v408_v5 = vmul.f32 %v393_v45, %v319_v42  ;;  %v409_v6 = vmul.f32 %v393_v45, %v320_v46  ;;  %v410_v7 = vmul.f32 %v393_v45, %v321_v47  ;;  %v411_v11 = vmul.f32 %v393_v45, %v322_v48 }
  0x30   : > { %v412_v12 = vmul.f32 %v393_v45, %v323_v49  ;;  %v413_v13 = vmul.f32 %v397_v52, %v324_v50  ;;  %v414_v14 = vmul.f32 %v397_v52, %v325_v51  ;;  %v415_v17 = vmul.f32 %v397_v52, %v326_v53 }
  0x31   : > { %v416_v18 = vmul.f32 %v397_v52, %v327_v54  ;;  %v417_v19 = vmul.f32 %v397_v52, %v328_v55  ;;  %v418_v20 = vmul.f32 %v397_v52, %v329_v58  ;;  %v419_v21 = vmul.f32 %v397_v52, %v330_v59 }
  0x32   : > { %v420_v22 = vmul.f32 %v397_v52, %v331_v60  ;;  %v421_v23 = vmul.f32 %v401_v61, %v332_v1  ;;  %v422_v24 = vmul.f32 %v401_v61, %v333_v2  ;;  %v423_v25 = vmul.f32 %v401_v61, %v334_v3 }
  0x33   : > { %v424_v26 = vmul.f32 %v401_v61, %v335_v8  ;;  %v425_v27 = vmul.f32 %v401_v61, %v336_v9  ;;  %v426_v28 = vmul.f32 %v401_v61, %v337_v10  ;;  %v427_v29 = vmul.f32 %v401_v61, %v338_v15 }
  0x34   : > { %v428_v30 = vmul.f32 %v401_v61, %v339_v16  ;;  %v440_v31 = vrot.slane %v389_v56, %v392_v35  ;;  %v444_v32 = vadd.f32 %v432_v57, %v405_v62  ;;  %v445_v33 = vadd.f32 %v432_v57, %v406_v63 }
  0x35   : > { %v446_v34 = vadd.f32 %v432_v57, %v407_v4  ;;  %v447_v36 = vadd.f32 %v432_v57, %v408_v5  ;;  %v448_v37 = vadd.f32 %v432_v57, %v409_v6  ;;  %v449_v38 = vadd.f32 %v432_v57, %v410_v7 }
  0x36   : > { %v450_v39 = vadd.f32 %v432_v57, %v411_v11  ;;  %v452_v40 = vadd.f32 %v436_v0, %v413_v13  ;;  %v453_v41 = vadd.f32 %v436_v0, %v414_v14  ;;  %v451_v42 = vadd.f32 %v432_v57, %v412_v12 }
  0x37   : > { %v454_v43 = vadd.f32 %v436_v0, %v415_v17  ;;  %v455_v44 = vadd.f32 %v436_v0, %v416_v18  ;;  %v456_v45 = vadd.f32 %v436_v0, %v417_v19  ;;  %v457_v46 = vadd.f32 %v436_v0, %v418_v20 }
  0x38   : > { %v458_v47 = vadd.f32 %v436_v0, %v419_v21  ;;  %v460_v48 = vadd.f32 %v440_v31, %v421_v23  ;;  %v461_v49 = vadd.f32 %v440_v31, %v422_v24  ;;  %v459_v50 = vadd.f32 %v436_v0, %v420_v22 }
  0x39   : > { %v462_v51 = vadd.f32 %v440_v31, %v423_v25  ;;  %v463_v35 = vadd.f32 %v440_v31, %v424_v26  ;;  %v464_v52 = vadd.f32 %v440_v31, %v425_v27  ;;  %v468_v53 = vmax.f32 %v444_v32, 0.0 }
  0x3a   : > { %v469_v54 = vmax.f32 %v445_v33, 0.0  ;;  %v476_v55 = vmax.f32 %v452_v40, 0.0  ;;  %v477_v56 = vmax.f32 %v453_v41, 0.0  ;;  %v470_v58 = vmax.f32 %v446_v34, 0.0 }
  0x3b   : > { %v471_v59 = vmax.f32 %v447_v36, 0.0  ;;  %v478_v60 = vmax.f32 %v454_v43, 0.0  ;;  %v479_v61 = vmax.f32 %v455_v44, 0.0  ;;  %v472_v57 = vmax.f32 %v448_v37, 0.0 }
  0x3c   : > { %v480_v62 = vmax.f32 %v456_v45, 0.0  ;;  %v484_v63 = vmax.f32 %v460_v48, 0.0  ;;  %v485_v1 = vmax.f32 %v461_v49, 0.0  ;;  %v465_v2 = vadd.f32 %v440_v31, %v426_v28  ;;  %v508_v45 = vld [vmem:[#allocation2] sm:$0x1] }
  0x3d   : > { %v466_v3 = vadd.f32 %v440_v31, %v427_v29  ;;  %v473_v4 = vmax.f32 %v449_v38, 0.0  ;;  %v486_v5 = vmax.f32 %v462_v51, 0.0  ;;  %v481_v0 = vmax.f32 %v457_v46, 0.0 }
  0x3e   : > { %v487_v6 = vmax.f32 %v463_v35, 0.0  ;;  %v492_v7 = vadd.f32 %v476_v55, %v468_v53  ;;  %v494_v8 = vadd.f32 %v477_v56, %v469_v54  ;;  %v474_v9 = vmax.f32 %v450_v39, 0.0 }
  0x3f   : > { %v482_v10 = vmax.f32 %v458_v47, 0.0  ;;  %v496_v11 = vadd.f32 %v478_v60, %v470_v58  ;;  %v498_v12 = vadd.f32 %v479_v61, %v471_v59  ;;  %v488_v13 = vmax.f32 %v464_v52, 0.0 }
  0x40   : > { %v493_v14 = vadd.f32 %v492_v7, %v484_v63  ;;  %v495_v15 = vadd.f32 %v494_v8, %v485_v1  ;;  %v500_v16 = vadd.f32 %v480_v62, %v472_v57  ;;  %v467_v17 = vadd.f32 %v440_v31, %v428_v30 }
  0x41   : > { %v475_v18 = vmax.f32 %v451_v42, 0.0  ;;  %v483_v19 = vmax.f32 %v459_v50, 0.0  ;;  %v497_v20 = vadd.f32 %v496_v11, %v486_v5  ;;  %v489_v21 = vmax.f32 %v465_v2, 0.0 }
  0x42   : > { %v499_v22 = vadd.f32 %v498_v12, %v487_v6  ;;  %v502_v23 = vadd.f32 %v481_v0, %v473_v4  ;;  %v509_v24 = vadd.f32 %v495_v15, %v493_v14  ;;  %v490_v25 = vmax.f32 %v466_v3, 0.0 }
  0x43   : > { %v501_v26 = vadd.f32 %v500_v16, %v488_v13  ;;  %v504_v27 = vadd.f32 %v482_v10, %v474_v9  ;;  %v491_v29 = vmax.f32 %v467_v17, 0.0  ;;  %v506_v33 = vadd.f32 %v483_v19, %v475_v18 }
  0x44   : > { %v510_v28 = vadd.f32 %v509_v24, %v497_v20  ;;  %v503_v32 = vadd.f32 %v502_v23, %v489_v21 }
  0x45   : > { %v505_v36 = vadd.f32 %v504_v27, %v490_v25  ;;  %v507_v30 = vadd.f32 %v506_v33, %v491_v29 }
  0x46   : > { %v511_v34 = vadd.f32 %v510_v28, %v499_v22 }
  0x48   : > { %v512_v37 = vadd.f32 %v511_v34, %v501_v26 }
  0x4a   : > { %v513_v31 = vadd.f32 %v512_v37, %v503_v32 }
  0x4c   : > { %v514_v38 = vadd.f32 %v513_v31, %v505_v36 }
  0x4e   : > { %v515_v39 = vadd.f32 %v514_v38, %v507_v30 }
  0x50   : > { %v516_v40 = vrot.slane %v515_v39, 4 }
  0x52   : > { %v517_v41 = vadd.f32 %v516_v40, %v515_v39 }
  0x54   : > { %v518_v42 = vrot.slane %v517_v41, 2 }
  0x56   : > { %v519_v43 = vadd.f32 %v518_v42, %v517_v41 }
  0x58   : > { %v520_v44 = vrot.slane %v519_v43, 1 }
  0x5a   : > { %v521_v46 = vadd.f32 %v520_v44, %v519_v43 }
  0x5c   : > { %v522_v47 = vadd.f32 %v521_v46, %v508_v45 }
  0x5e   : > { %523 = vst [vmem:[#allocation2] sm:$0x1] %v522_v47 }
  0x65   : > { %v527_v48 = vld [vmem:[#allocation2] sm:$0x1] }
  0x66   : > { %528 = vst [vmem:[%s310_s10] sm:$0x1] %v527_v48 }
  0x67 PF: > { %s13_s16 = sadd.s32 1, %s687_s16   ;;  %s865_s12 = smov %s675_s13 }
  0x68   : > { %p10_p10 = scmp.ge.s32.totalorder %s13_s16, 4   ;;  %s866_s13 = smov %s746_s20 }
  0x69   : > { %s867_s14 = smov %s683_s15  ;;  %s868_s15 = smov %s870_s17 }
  0x6a   :  { %12 = sbr.rel (!%p10_p10) target bundleno = 3 (0x3), region = 113 }

// kernel: _lambda_.4
= control target key start
LH: loop header
LB: loop body
LE: loop exit
PB: predicated region body
PF: predicated region fallthrough
CT: control target
= control target key end

     0   :  { %s1434_s12 = smov 0   ;;  %s1436_s13 = smov 0   ;;  %s1906_s0 = inlined_call_operand.vmem [shape: bf16[3,9,512,32], index: 0, kind: input, shape index: {}]   ;;  %s1907_s1 = inlined_call_operand.vmem [shape: bf16[3,9,32,32], index: 1, kind: input, shape index: {}]   ;;  %s1908_s2 = inlined_call_operand.vmem [shape: f32[3,512,32], index: 2, kind: output, shape index: {0}]   ;;  %s1909_s3 = inlined_call_operand.vmem [shape: f32[3,2,2,32], index: 3, kind: output, shape index: {1}]  }
   0x1   :  { %s1438_s14 = smov 0   ;;  %s1440_s15 = smov 0  }
   0x2   :  { %s1442_s16 = smov 0   ;;  %s1444_s17 = smov 0  }
   0x3   :  { %s1446_s18 = smov 0  }
   0x4 LB: > { %s26_s19 = sadd.s32 1, %s1399_s15  ;;  %s29_s20 = sadd.s32 1, %s1403_s16  ;;  %s1411_s18 = sphi %s1446_s18, %s14_s18   ;;  %s1407_s17 = sphi %s1444_s17, %s1921_s17   ;;  %s1403_s16 = sphi %s1442_s16, %s1920_s16   ;;  %s1399_s15 = sphi %s1440_s15, %s1919_s15   ;;  %s1395_s14 = sphi %s1438_s14, %s1918_s14   ;;  %s1391_s13 = sphi %s1436_s13, %s1917_s13   ;;  %s1387_s12 = sphi %s1434_s12, %s1916_s12  }
   0x5   : > { %p27_p0 = scmp.ge.s32.totalorder %s26_s19, 9  ;;  %p1173_p1 = scmp.ge.s32.totalorder %s1411_s18, 1 }
   0x6   : > { %p192_p2 = scmp.lt.s32.totalorder %s1411_s18, 55  ;;  %s33_s21 = sadd.s32 1, %s1407_s17 }
   0x7   : > { %s1923_s19 = smov (%p27_p0, %s26_s19), 0  ;;  %s1925_s20 = smov (!%p27_p0, %s29_s20), %s1403_s16 }
   0x8   : > { %1910 = sst [smem:[#allocation3_spill]] %s1923_s19  ;;  %p193_p3 = pnand %p1173_p1, %p192_p2 }
   0x9   : > { %p31_p4 = scmp.ge.s32.totalorder %s1925_s20, 2  ;;  %s1174_s22 = sshll.u32 (!%p193_p3), %s1391_s13, 5 }
   0xa   : > { %196 = sbr.rel (%p193_p3) target bundleno = 355 (0x163), region = 28  ;;  %p246_p6 = scmp.lt.s32.totalorder (!%p193_p3), %s1395_s14, 2 }
   0xb   : > { %s1927_s20 = smov (%p31_p4, %s1925_s20), 0  ;;  %s1929_s21 = smov (!%p31_p4, %s33_s21), %s1407_s17 }
   0xc   : > { %1911 = sst [smem:[#allocation4_spill]] %s1927_s20  ;;  %p35_p5 = scmp.ge.s32.totalorder %s1929_s21, 3 }
   0xd   : > { %p248_p7 = scmp.lt.s32.totalorder (!%p193_p3), %s1387_s12, 8  ;;  %p250_p8 = scmp.lt.s32.totalorder (!%p193_p3), %s1174_s22, 63 }
   0xe   : > { %s1931_s21 = smov (%p35_p5, %s1929_s21), 0  ;;  %p280_p9 = scmp.lt.s32.totalorder (!%p193_p3), %s1391_s13, 1 }
   0xf   : > { %1912 = sst [smem:[#allocation5_spill]] %s1931_s21  ;;  %p1184_p10 = scmp.ne.s32.totalorder (!%p193_p3), %s1387_s12, 0 }
  0x11   : > { %s1933_s14 = smov (!%p246_p6, %s1395_s14), 2  ;;  %s1935_s22 = smov (!%p250_p8, %s1174_s22), 63 }
  0x12   : > { %s249_s23 = scalar_select %p248_p7, %s1387_s12, 8 }
  0x13   : > { %s1280_s25 = smul.u32 576, %s1933_s14  ;;  %s1180_s4 = sshll.u32 %s1933_s14, 6  ;;  %vm291_vm0 = vcmask (!%p1184_p10), 261120   ;;  %v1413_v0 = vmov (!%p1184_p10), 0.0  }
  0x14   : > { %s1175_s24 = sshll.u32 %s249_s23, 6  ;;  %s1177_s27 = sshll.u32 %s249_s23, 2  ;;  %292 = vst.msk [vmem:[#allocation2] sm:$0xff] (!%p1184_p10), %vm291_vm0, %v1413_v0  ;;  %293 = vst.msk [vmem:[#allocation2 + $0x8] sm:$0xff] (!%p1184_p10), %vm291_vm0, %v1413_v0 }
  0x15   : > { %s253_s26 = sadd.s32 %s1175_s24, %s1935_s22  ;;  %s1281_s29 = smul.u32 36, %s1933_s14  ;;  %294 = vst.msk [vmem:[#allocation2 + $0x10] sm:$0xff] (!%p1184_p10), %vm291_vm0, %v1413_v0  ;;  %295 = vst.msk [vmem:[#allocation2 + $0x18] sm:$0xff] (!%p1184_p10), %vm291_vm0, %v1413_v0 }
  0x16   : > { %s255_s28 = sadd.s32 %s1280_s25, %s253_s26  ;;  %s274_s10 = sadd.s32 %s1180_s4, %s1935_s22  ;;  %296 = vst.msk [vmem:[#allocation2 + $0x20] sm:$0xff] (!%p1184_p10), %vm291_vm0, %v1413_v0  ;;  %297 = vst.msk [vmem:[#allocation2 + $0x28] sm:$0xff] (!%p1184_p10), %vm291_vm0, %v1413_v0 }
  0x17   : > { %s1176_s30 = sshll.u32 %s255_s28, 2  ;;  %s265_s8 = sadd.s32 %s1281_s29, %s1177_s27  ;;  %298 = vst.msk [vmem:[#allocation2 + $0x30] sm:$0xff] (!%p1184_p10), %vm291_vm0, %v1413_v0  ;;  %299 = vst.msk [vmem:[#allocation2 + $0x38] sm:$0xff] (!%p1184_p10), %vm291_vm0, %v1413_v0 }
  0x18   : > { %s1486_s7 = scalar_lea.vmem %s1906_s0, %s1176_s30  ;;  %s1178_s9 = sshll.u32 %s265_s8, 2  ;;  %300 = vst.msk [vmem:[#allocation2 + $0x40] sm:$0xff] (!%p1184_p10), %vm291_vm0, %v1413_v0  ;;  %301 = vst.msk [vmem:[#allocation2 + $0x48] sm:$0xff] (!%p1184_p10), %vm291_vm0, %v1413_v0 }
  0x19   : > { %s1491_s20 = scalar_lea.vmem %s1907_s1, %s1178_s9  ;;  %s1181_s19 = sshll.u32 %s274_s10, 3  ;;  %302 = vst.msk [vmem:[#allocation2 + $0x50] sm:$0xff] (!%p1184_p10), %vm291_vm0, %v1413_v0  ;;  %303 = vst.msk [vmem:[#allocation2 + $0x58] sm:$0xff] (!%p1184_p10), %vm291_vm0, %v1413_v0 }
  0x1a   : > { %s1496_s25 = scalar_lea.vmem %s1908_s2, %s1181_s19  ;;  %s1182_s26 = sshll.u32 %s1933_s14, 1  ;;  %304 = vst.msk [vmem:[#allocation2 + $0x60] sm:$0xff] (!%p1184_p10), %vm291_vm0, %v1413_v0  ;;  %305 = vst.msk [vmem:[#allocation2 + $0x68] sm:$0xff] (!%p1184_p10), %vm291_vm0, %v1413_v0 }
  0x1b   : > { %s1937_s13 = smov (!%p280_p9, %s1391_s13), 1  ;;  %290 = sbr.rel (%p1184_p10) target bundleno = 37 (0x25), region = 32 }
  0x1c   : > { %s283_s28 = sadd.s32 %s1182_s26, %s1937_s13  ;;  %306 = vst.msk [vmem:[#allocation2 + $0x70] sm:$0xff] (!%p1184_p10), %vm291_vm0, %v1413_v0  ;;  %307 = vst.msk [vmem:[#allocation2 + $0x78] sm:$0xff] (!%p1184_p10), %vm291_vm0, %v1413_v0 }
  0x1d   : > { %s1183_s30 = sshll.u32 %s283_s28, 1  ;;  %308 = vst.msk [vmem:[#allocation2 + $0x80] sm:$0xff] (!%p1184_p10), %vm291_vm0, %v1413_v0  ;;  %309 = vst.msk [vmem:[#allocation2 + $0x88] sm:$0xff] (!%p1184_p10), %vm291_vm0, %v1413_v0 }
  0x1e   : > { %s1503_s22 = scalar_lea.vmem %s1909_s3, %s1183_s30  ;;  %310 = vst.msk [vmem:[#allocation2 + $0x90] sm:$0xff] (!%p1184_p10), %vm291_vm0, %v1413_v0  ;;  %311 = vst.msk [vmem:[#allocation2 + $0x98] sm:$0xff] (!%p1184_p10), %vm291_vm0, %v1413_v0 }
  0x1f   : > { %312 = vst.msk [vmem:[#allocation2 + $0xa0] sm:$0xff] (!%p1184_p10), %vm291_vm0, %v1413_v0  ;;  %313 = vst.msk [vmem:[#allocation2 + $0xa8] sm:$0xff] (!%p1184_p10), %vm291_vm0, %v1413_v0 }
  0x20   : > { %314 = vst.msk [vmem:[#allocation2 + $0xb0] sm:$0xff] (!%p1184_p10), %vm291_vm0, %v1413_v0  ;;  %315 = vst.msk [vmem:[#allocation2 + $0xb8] sm:$0xff] (!%p1184_p10), %vm291_vm0, %v1413_v0 }
  0x21   : > { %316 = vst.msk [vmem:[#allocation2 + $0xc0] sm:$0xff] (!%p1184_p10), %vm291_vm0, %v1413_v0  ;;  %317 = vst.msk [vmem:[#allocation2 + $0xc8] sm:$0xff] (!%p1184_p10), %vm291_vm0, %v1413_v0 }
  0x22   : > { %318 = vst.msk [vmem:[#allocation2 + $0xd0] sm:$0xff] %vm291_vm0, %v1413_v0  ;;  %319 = vst.msk [vmem:[#allocation2 + $0xd8] sm:$0xff] %vm291_vm0, %v1413_v0 }
  0x23   : > { %320 = vst.msk [vmem:[#allocation2 + $0xe0] sm:$0xff] %vm291_vm0, %v1413_v0  ;;  %321 = vst.msk [vmem:[#allocation2 + $0xe8] sm:$0xff] %vm291_vm0, %v1413_v0 }
  0x24   : > { %322 = vst.msk [vmem:[#allocation2 + $0xf0] sm:$0xff] %vm291_vm0, %v1413_v0  ;;  %323 = vst.msk [vmem:[#allocation2 + $0xf8] sm:$0xff] %vm291_vm0, %v1413_v0 }
  0x25 PF: > { %v1339_v1 = vld [vmem:[%s1491_s20] sm:$0xff]   ;;  %v1340_v2 = vld [vmem:[%s1491_s20 + $0x8] sm:$0xff]   ;;  %vm484_vm1 = vcmask 261120   ;;  %v1345_v7 = vld [vmem:[%s1486_s7 + $0x10] sm:$0xff]   ;;  %p1219_p11 = scmp.ne.s32.totalorder %s1387_s12, 8 }
  0x26   : > { %1240 = vmatprep.subr.bf16.mxu0 %v1339_v1  ;;  %1276 = vmatprep.subr.bf16.mxu1 %v1339_v1  ;;  %v1341_v3 = vld [vmem:[%s1486_s7] sm:$0xff]   ;;  %v1343_v5 = vld [vmem:[%s1486_s7 + $0x8] sm:$0xff]   ;;  %v1346_v8 = vld [vmem:[%s1486_s7 + $0x50] sm:$0xff]   ;;  %vm895_vm2 = vcmask (!%p1219_p11), 253952  }
  0x27   : > { %1241 = vmatpush3.bf16.msra.mxu0 %v1339_v1  ;;  %1278 = vmatpush3.bf16.msra.mxu1 %v1339_v1  ;;  %v1342_v4 = vld [vmem:[%s1486_s7 + $0x40] sm:$0xff]   ;;  %v1344_v6 = vld [vmem:[%s1486_s7 + $0x48] sm:$0xff]   ;;  %v1347_v9 = vld [vmem:[%s1486_s7 + $0x18] sm:$0xff]  }
  0x28   : > { %1242 = vmatprep.subr.bf16.mxu0 %v1340_v2  ;;  %1277 = vmatprep.subr.bf16.mxu1 %v1340_v2  ;;  %v1348_v10 = vld [vmem:[%s1486_s7 + $0x58] sm:$0xff]   ;;  %v1349_v11 = vld [vmem:[%s1486_s7 + $0x20] sm:$0xff]   ;;  %v1351_v13 = vld [vmem:[%s1486_s7 + $0x28] sm:$0xff]  }
  0x29   : > { %1244 = vmatprep.mubr.msk.bf16.mxu0 %vm484_vm1, %v1341_v3  ;;  %1260 = vmatprep.mubr.msk.bf16.mxu1 %vm484_vm1, %v1342_v4  ;;  %v1350_v12 = vld [vmem:[%s1486_s7 + $0x60] sm:$0xff]   ;;  %v1352_v14 = vld [vmem:[%s1486_s7 + $0x68] sm:$0xff]   ;;  %v1353_v15 = vld [vmem:[%s1486_s7 + $0x30] sm:$0xff]  }
  0x2a   : > { %v1354_v16 = vld [vmem:[%s1486_s7 + $0x70] sm:$0xff]   ;;  %v1355_v17 = vld [vmem:[%s1486_s7 + $0x38] sm:$0xff]   ;;  %v324_v21 = vld [vmem:[#allocation2] sm:$0xff] }
  0x2b   : > { %1243 = vmatpush3.bf16.msra.mxu0 %v1340_v2  ;;  %1279 = vmatpush3.bf16.msra.mxu1 %v1340_v2  ;;  %v1356_v18 = vld [vmem:[%s1486_s7 + $0x78] sm:$0xff]   ;;  %v326_v19 = vld [vmem:[#allocation2 + $0x10] sm:$0xff]  ;;  %v340_v22 = vld [vmem:[#allocation2 + $0x80] sm:$0xff] }
  0x2c   : > { %v342_v20 = vld [vmem:[#allocation2 + $0x90] sm:$0xff]  ;;  %v327_v25 = vld [vmem:[#allocation2 + $0x18] sm:$0xff]  ;;  %v325_v31 = vld [vmem:[#allocation2 + $0x8] sm:$0xff] }
  0x2d   : > { %v343_v26 = vld [vmem:[#allocation2 + $0x98] sm:$0xff]  ;;  %v341_v32 = vld [vmem:[#allocation2 + $0x88] sm:$0xff]  ;;  %v330_v43 = vld [vmem:[#allocation2 + $0x30] sm:$0xff] }
  0x2e   : > { %1245 = vmatmul.mubr.msk.bf16.vlgmr.msra.gmra.mrb[0].mxu0 %vm484_vm1, %v1343_v5  ;;  %1261 = vmatmul.mubr.msk.bf16.vlgmr.msra.gmra.mrb[0].mxu1 %vm484_vm1, %v1344_v6  ;;  %v346_v44 = vld [vmem:[#allocation2 + $0xb0] sm:$0xff]  ;;  %v328_v45 = vld [vmem:[#allocation2 + $0x20] sm:$0xff]  ;;  %v331_v49 = vld [vmem:[#allocation2 + $0x38] sm:$0xff] }
  0x2f   : > { %1248 = vmatprep.mubr.msk.bf16.mxu0 %vm484_vm1, %v1345_v7  ;;  %1264 = vmatprep.mubr.msk.bf16.mxu1 %vm484_vm1, %v1346_v8  ;;  %v344_v46 = vld [vmem:[#allocation2 + $0xa0] sm:$0xff]  ;;  %v347_v50 = vld [vmem:[#allocation2 + $0xb8] sm:$0xff]  ;;  %v329_v55 = vld [vmem:[#allocation2 + $0x28] sm:$0xff] }
  0x30   : > { %v345_v56 = vld [vmem:[#allocation2 + $0xa8] sm:$0xff]  ;;  %v334_v3 = vld [vmem:[#allocation2 + $0x50] sm:$0xff]  ;;  %v332_v5 = vld [vmem:[#allocation2 + $0x40] sm:$0xff] }
  0x31   : > { %v350_v4 = vld [vmem:[#allocation2 + $0xd0] sm:$0xff]  ;;  %v348_v6 = vld [vmem:[#allocation2 + $0xc0] sm:$0xff] }
  0x36   : > { %1249 = vmatmul.mubr.msk.bf16.gmra.mrb[4].mxu0 %vm484_vm1, %v1347_v9  ;;  %1265 = vmatmul.mubr.msk.bf16.gmra.mrb[4].mxu1 %vm484_vm1, %v1348_v10  ;;  %v335_v9 = vld [vmem:[#allocation2 + $0x58] sm:$0xff] }
  0x37   : > { %1252 = vmatprep.mubr.msk.bf16.mxu0 %vm484_vm1, %v1349_v11  ;;  %1268 = vmatprep.mubr.msk.bf16.mxu1 %vm484_vm1, %v1350_v12  ;;  %v351_v10 = vld [vmem:[#allocation2 + $0xd8] sm:$0xff] }
  0x3e   : > { %1253 = vmatmul.mubr.msk.bf16.gmra.mrb[8].mxu0 %vm484_vm1, %v1351_v13  ;;  %1269 = vmatmul.mubr.msk.bf16.gmra.mrb[8].mxu1 %vm484_vm1, %v1352_v14 }
  0x3f   : > { %1256 = vmatprep.mubr.msk.bf16.mxu0 %vm484_vm1, %v1353_v15  ;;  %1272 = vmatprep.mubr.msk.bf16.mxu1 %vm484_vm1, %v1354_v16  ;;  %v333_v15 = vld [vmem:[#allocation2 + $0x48] sm:$0xff] }
  0x40   : > { %v349_v16 = vld [vmem:[#allocation2 + $0xc8] sm:$0xff] }
  0x46   : > { %1257 = vmatmul.mubr.msk.bf16.gmra.mrb[12].mxu0 %vm484_vm1, %v1355_v17  ;;  %1273 = vmatmul.mubr.msk.bf16.gmra.mrb[12].mxu1 %vm484_vm1, %v1356_v18 }
 0x101   : > { %v1246_v23 = vpop.f32.mrb[0].mxu0  ;;  %v1262_v24 = vpop.f32.mrb[0].mxu1 }
 0x102   : > { %v696_v27 = vadd.f32 %v1246_v23, %v326_v19  ;;  %v712_v28 = vadd.f32 %v1262_v24, %v342_v20  ;;  %v567_v29 = vpop.f32.mrb[1].mxu0  ;;  %v631_v30 = vpop.f32.mrb[1].mxu1 }
 0x103   : > { %v694_v33 = vadd.f32 %v567_v29, %v324_v21  ;;  %v710_v34 = vadd.f32 %v631_v30, %v340_v22  ;;  %v1247_v35 = vpop.f32.mrb[2].mxu0  ;;  %v1263_v36 = vpop.f32.mrb[2].mxu1  ;;  %v336_v29 = vld [vmem:[#allocation2 + $0x60] sm:$0xff] }
 0x104   : > { %728 = vst.msk [vmem:[#allocation2 + $0x10] sm:$0xff] %vm484_vm1, %v696_v27  ;;  %744 = vst.msk [vmem:[#allocation2 + $0x90] sm:$0xff] %vm484_vm1, %v712_v28  ;;  %v697_v37 = vadd.f32 %v1247_v35, %v327_v25  ;;  %v713_v38 = vadd.f32 %v1263_v36, %v343_v26  ;;  %v570_v39 = vpop.f32.mrb[3].mxu0  ;;  %v634_v40 = vpop.f32.mrb[3].mxu1  ;;  %v338_v27 = vld [vmem:[#allocation2 + $0x70] sm:$0xff]  ;;  %v352_v30 = vld [vmem:[#allocation2 + $0xe0] sm:$0xff] }
 0x105   : > { %726 = vst.msk [vmem:[#allocation2] sm:$0xff] %vm484_vm1, %v694_v33  ;;  %742 = vst.msk [vmem:[#allocation2 + $0x80] sm:$0xff] %vm484_vm1, %v710_v34  ;;  %v695_v41 = vadd.f32 %v570_v39, %v325_v31  ;;  %v711_v42 = vadd.f32 %v634_v40, %v341_v32  ;;  %v354_v28 = vld [vmem:[#allocation2 + $0xf0] sm:$0xff]  ;;  %v339_v33 = vld [vmem:[#allocation2 + $0x78] sm:$0xff] }
 0x106   : > { %729 = vst.msk [vmem:[#allocation2 + $0x18] sm:$0xff] %vm484_vm1, %v697_v37  ;;  %745 = vst.msk [vmem:[#allocation2 + $0x98] sm:$0xff] %vm484_vm1, %v713_v38  ;;  %v355_v34 = vld [vmem:[#allocation2 + $0xf8] sm:$0xff]  ;;  %v337_v39 = vld [vmem:[#allocation2 + $0x68] sm:$0xff] }
 0x107   : > { %727 = vst.msk [vmem:[#allocation2 + $0x8] sm:$0xff] %vm484_vm1, %v695_v41  ;;  %743 = vst.msk [vmem:[#allocation2 + $0x88] sm:$0xff] %vm484_vm1, %v711_v42  ;;  %v353_v40 = vld [vmem:[#allocation2 + $0xe8] sm:$0xff] }
 0x109   : > { %v1250_v47 = vpop.f32.mrb[4].mxu0  ;;  %v1266_v48 = vpop.f32.mrb[4].mxu1 }
 0x10a   : > { %v700_v51 = vadd.f32 %v1250_v47, %v330_v43  ;;  %v716_v52 = vadd.f32 %v1266_v48, %v346_v44  ;;  %v583_v53 = vpop.f32.mrb[5].mxu0  ;;  %v647_v54 = vpop.f32.mrb[5].mxu1 }
 0x10b   : > { %v698_v57 = vadd.f32 %v583_v53, %v328_v45  ;;  %v714_v58 = vadd.f32 %v647_v54, %v344_v46  ;;  %v1251_v59 = vpop.f32.mrb[6].mxu0  ;;  %v1267_v60 = vpop.f32.mrb[6].mxu1  ;;  %v764_v53 = vld [vmem:[#allocation2 + $0x10] sm:$0xff] (!%p1219_p11) }
 0x10c   : > { %732 = vst.msk [vmem:[#allocation2 + $0x30] sm:$0xff] %vm484_vm1, %v700_v51  ;;  %748 = vst.msk [vmem:[#allocation2 + $0xb0] sm:$0xff] %vm484_vm1, %v716_v52  ;;  %v701_v61 = vadd.f32 %v1251_v59, %v331_v49  ;;  %v717_v62 = vadd.f32 %v1267_v60, %v347_v50  ;;  %v586_v63 = vpop.f32.mrb[7].mxu0  ;;  %v650_v0 = vpop.f32.mrb[7].mxu1  ;;  %v762_v51 = vld [vmem:[#allocation2] sm:$0xff] (!%p1219_p11) }
 0x10d   : > { %730 = vst.msk [vmem:[#allocation2 + $0x20] sm:$0xff] %vm484_vm1, %v698_v57  ;;  %746 = vst.msk [vmem:[#allocation2 + $0xa0] sm:$0xff] %vm484_vm1, %v714_v58  ;;  %v699_v1 = vadd.f32 %v586_v63, %v329_v55  ;;  %v715_v2 = vadd.f32 %v650_v0, %v345_v56  ;;  %v826_v54 = vsel (!%p1219_p11), %vm484_vm1, %v762_v51, 0.0  ;;  %v897_v55 = vmul.f32 (!%p1219_p11), %v762_v51, %v762_v51  ;;  %v765_v58 = vld [vmem:[#allocation2 + $0x18] sm:$0xff] (!%p1219_p11) }
 0x10e   : > { %733 = vst.msk [vmem:[#allocation2 + $0x38] sm:$0xff] %vm484_vm1, %v701_v61  ;;  %749 = vst.msk [vmem:[#allocation2 + $0xb8] sm:$0xff] %vm484_vm1, %v717_v62  ;;  %v763_v52 = vld [vmem:[#allocation2 + $0x8] sm:$0xff] (!%p1219_p11)  ;;  %v829_v62 = vsel (!%p1219_p11), %vm484_vm1, %v764_v53, 0.0  ;;  %v899_v63 = vmul.f32 (!%p1219_p11), %v764_v53, %v764_v53 }
 0x10f   : > { %731 = vst.msk [vmem:[#allocation2 + $0x28] sm:$0xff] %vm484_vm1, %v699_v1  ;;  %747 = vst.msk [vmem:[#allocation2 + $0xa8] sm:$0xff] %vm484_vm1, %v715_v2  ;;  %v827_v56 = vsel (!%p1219_p11), %vm484_vm1, %v763_v52, 0.0  ;;  %v898_v57 = vmul.f32 (!%p1219_p11), %v763_v52, %v763_v52 }
 0x110   : > { %794 = vst.msk [vmem:[%s1496_s25] sm:$0xff] (!%p1219_p11), %vm484_vm1, %v762_v51  ;;  %795 = vst.msk [vmem:[%s1496_s25 + $0x8] sm:$0xff] (!%p1219_p11), %vm484_vm1, %v763_v52  ;;  %v828_v61 = vadd.f32 (!%p1219_p11), %v827_v56, %v826_v54 }
 0x111   : > { %v1254_v7 = vpop.f32.mrb[8].mxu0  ;;  %v1270_v8 = vpop.f32.mrb[8].mxu1  ;;  %796 = vst.msk [vmem:[%s1496_s25 + $0x10] sm:$0xff] (!%p1219_p11), %vm484_vm1, %v764_v53  ;;  %797 = vst.msk [vmem:[%s1496_s25 + $0x18] sm:$0xff] (!%p1219_p11), %vm484_vm1, %v765_v58 }
 0x112   : > { %v704_v11 = vadd.f32 %v1254_v7, %v334_v3  ;;  %v720_v12 = vadd.f32 %v1270_v8, %v350_v4  ;;  %v599_v13 = vpop.f32.mrb[9].mxu0  ;;  %v663_v14 = vpop.f32.mrb[9].mxu1  ;;  %v929_v3 = vsel (!%p1219_p11), %vm484_vm1, %v897_v55, 0.0  ;;  %v930_v4 = vsel (!%p1219_p11), %vm484_vm1, %v898_v57, 0.0 }
 0x113   : > { %v702_v17 = vadd.f32 %v599_v13, %v332_v5  ;;  %v718_v18 = vadd.f32 %v663_v14, %v348_v6  ;;  %v1255_v19 = vpop.f32.mrb[10].mxu0  ;;  %v1271_v20 = vpop.f32.mrb[10].mxu1  ;;  %v768_v0 = vld [vmem:[#allocation2 + $0x30] sm:$0xff] (!%p1219_p11)  ;;  %v831_v5 = vsel (!%p1219_p11), %vm484_vm1, %v765_v58, 0.0  ;;  %v900_v6 = vmul.f32 (!%p1219_p11), %v765_v58, %v765_v58 }
 0x114   : > { %736 = vst.msk [vmem:[#allocation2 + $0x50] sm:$0xff] %vm484_vm1, %v704_v11  ;;  %752 = vst.msk [vmem:[#allocation2 + $0xd0] sm:$0xff] %vm484_vm1, %v720_v12  ;;  %v705_v21 = vadd.f32 %v1255_v19, %v335_v9  ;;  %v721_v22 = vadd.f32 %v1271_v20, %v351_v10  ;;  %v602_v23 = vpop.f32.mrb[11].mxu0  ;;  %v666_v24 = vpop.f32.mrb[11].mxu1  ;;  %v766_v59 = vld [vmem:[#allocation2 + $0x20] sm:$0xff] (!%p1219_p11)  ;;  %v931_v10 = vadd.f32 (!%p1219_p11), %v930_v4, %v929_v3  ;;  %v932_v12 = vsel (!%p1219_p11), %vm484_vm1, %v899_v63, 0.0 }
 0x115   : > { %734 = vst.msk [vmem:[#allocation2 + $0x40] sm:$0xff] %vm484_vm1, %v702_v17  ;;  %750 = vst.msk [vmem:[#allocation2 + $0xc0] sm:$0xff] %vm484_vm1, %v718_v18  ;;  %v703_v25 = vadd.f32 %v602_v23, %v333_v15  ;;  %v719_v26 = vadd.f32 %v666_v24, %v349_v16  ;;  %v1620_v1 = vld [vmem:[#allocation2 + $0x38] sm:$0xff] (!%p1219_p11)  ;;  %v830_v11 = vadd.f32 (!%p1219_p11), %v829_v62, %v828_v61  ;;  %v934_v17 = vsel (!%p1219_p11), %vm484_vm1, %v900_v6, 0.0 }
 0x116   : > { %737 = vst.msk [vmem:[#allocation2 + $0x58] sm:$0xff] %vm484_vm1, %v705_v21  ;;  %753 = vst.msk [vmem:[#allocation2 + $0xd8] sm:$0xff] %vm484_vm1, %v721_v22  ;;  %v767_v60 = vld [vmem:[#allocation2 + $0x28] sm:$0xff] (!%p1219_p11)  ;;  %v901_v13 = vmul.f32 (!%p1219_p11), %v766_v59, %v766_v59  ;;  %v833_v18 = vsel (!%p1219_p11), %vm484_vm1, %v766_v59, 0.0  ;;  %v1670_v21 = vld [vmem:[#allocation2 + $0x80] sm:$0xff] (!%p1219_p11)  ;;  %v933_v23 = vadd.f32 (!%p1219_p11), %v932_v12, %v931_v10 }
 0x117   : > { %735 = vst.msk [vmem:[#allocation2 + $0x48] sm:$0xff] %vm484_vm1, %v703_v25  ;;  %751 = vst.msk [vmem:[#allocation2 + $0xc8] sm:$0xff] %vm484_vm1, %v719_v26  ;;  %v902_v19 = vmul.f32 (!%p1219_p11), %v767_v60, %v767_v60  ;;  %v1672_v22 = vld [vmem:[#allocation2 + $0x88] sm:$0xff] (!%p1219_p11)  ;;  %v832_v24 = vadd.f32 (!%p1219_p11), %v831_v5, %v830_v11  ;;  %v1683_v25 = vld [vmem:[#allocation2 + $0x90] sm:$0xff] (!%p1219_p11) }
 0x118   : > { %798 = vst.msk [vmem:[%s1496_s25 + $0x20] sm:$0xff] (!%p1219_p11), %vm484_vm1, %v766_v59  ;;  %799 = vst.msk [vmem:[%s1496_s25 + $0x28] sm:$0xff] (!%p1219_p11), %vm484_vm1, %v767_v60  ;;  %v1685_v26 = vld [vmem:[#allocation2 + $0x98] sm:$0xff] (!%p1219_p11) }
 0x119   : > { %v1258_v31 = vpop.f32.mrb[12].mxu0  ;;  %v1274_v32 = vpop.f32.mrb[12].mxu1  ;;  %761 = sbr.rel (%p1219_p11) target bundleno = 355 (0x163), region = 36  ;;  %800 = vst.msk [vmem:[%s1496_s25 + $0x30] sm:$0xff] (!%p1219_p11), %vm484_vm1, %v768_v0  ;;  %801 = vst.msk [vmem:[%s1496_s25 + $0x38] sm:$0xff] (!%p1219_p11), %vm484_vm1, %v1620_v1 }
 0x11a   : > { %v708_v35 = vadd.f32 %v1258_v31, %v338_v27  ;;  %v724_v36 = vadd.f32 %v1274_v32, %v354_v28  ;;  %v615_v37 = vpop.f32.mrb[13].mxu0  ;;  %v679_v38 = vpop.f32.mrb[13].mxu1  ;;  %810 = vst.msk [vmem:[%s1496_s25 + $0x80] sm:$0xff] (!%p1219_p11), %vm484_vm1, %v1670_v21  ;;  %811 = vst.msk [vmem:[%s1496_s25 + $0x88] sm:$0xff] (!%p1219_p11), %vm484_vm1, %v1672_v22  ;;  %v1687_v27 = vld [vmem:[#allocation2 + $0xa0] sm:$0xff] (!%p1219_p11)  ;;  %v936_v28 = vsel (!%p1219_p11), %vm484_vm1, %v901_v13, 0.0 }
 0x11b   : > { %v706_v41 = vadd.f32 %v615_v37, %v336_v29  ;;  %v722_v42 = vadd.f32 %v679_v38, %v352_v30  ;;  %v1259_v43 = vpop.f32.mrb[14].mxu0  ;;  %v1275_v44 = vpop.f32.mrb[14].mxu1  ;;  %v1637_v8 = vld [vmem:[#allocation2 + $0x50] sm:$0xff] (!%p1219_p11)  ;;  %v835_v29 = vsel (!%p1219_p11), %vm484_vm1, %v767_v60, 0.0  ;;  %v903_v30 = vmul.f32 (!%p1219_p11), %v768_v0, %v768_v0  ;;  %812 = vst.msk [vmem:[%s1496_s25 + $0x90] sm:$0xff] (!%p1219_p11), %vm484_vm1, %v1683_v25  ;;  %813 = vst.msk [vmem:[%s1496_s25 + $0x98] sm:$0xff] (!%p1219_p11), %vm484_vm1, %v1685_v26 }
 0x11c   : > { %740 = vst.msk [vmem:[#allocation2 + $0x70] sm:$0xff] %vm484_vm1, %v708_v35  ;;  %756 = vst.msk [vmem:[#allocation2 + $0xf0] sm:$0xff] %vm484_vm1, %v724_v36  ;;  %v709_v45 = vadd.f32 %v1259_v43, %v339_v33  ;;  %v725_v46 = vadd.f32 %v1275_v44, %v355_v34  ;;  %v618_v47 = vpop.f32.mrb[15].mxu0  ;;  %v682_v48 = vpop.f32.mrb[15].mxu1  ;;  %v1622_v2 = vld [vmem:[#allocation2 + $0x40] sm:$0xff] (!%p1219_p11)  ;;  %v1700_v31 = vld [vmem:[#allocation2 + $0xa8] sm:$0xff] (!%p1219_p11)  ;;  %v935_v34 = vadd.f32 (!%p1219_p11), %v934_v17, %v933_v23 }
 0x11d   : > { %738 = vst.msk [vmem:[#allocation2 + $0x60] sm:$0xff] %vm484_vm1, %v706_v41  ;;  %754 = vst.msk [vmem:[#allocation2 + $0xe0] sm:$0xff] %vm484_vm1, %v722_v42  ;;  %v707_v49 = vadd.f32 %v618_v47, %v337_v39  ;;  %v723_v50 = vadd.f32 %v682_v48, %v353_v40  ;;  %v1639_v9 = vld [vmem:[#allocation2 + $0x58] sm:$0xff] (!%p1219_p11)  ;;  %v1702_v32 = vld [vmem:[#allocation2 + $0xb0] sm:$0xff] (!%p1219_p11)  ;;  %v834_v35 = vadd.f32 (!%p1219_p11), %v833_v18, %v832_v24  ;;  %v938_v39 = vsel (!%p1219_p11), %vm484_vm1, %v902_v19, 0.0 }
 0x11e   : > { %741 = vst.msk [vmem:[#allocation2 + $0x78] sm:$0xff] %vm484_vm1, %v709_v45  ;;  %757 = vst.msk [vmem:[#allocation2 + $0xf8] sm:$0xff] %vm484_vm1, %v725_v46  ;;  %v1635_v7 = vld [vmem:[#allocation2 + $0x48] sm:$0xff] (!%p1219_p11)  ;;  %v1704_v33 = vld [vmem:[#allocation2 + $0xb8] sm:$0xff] (!%p1219_p11)  ;;  %v837_v40 = vsel (!%p1219_p11), %vm484_vm1, %v768_v0, 0.0  ;;  %v904_v41 = vmul.f32 (!%p1219_p11), %v1620_v1, %v1620_v1  ;;  %v937_v45 = vadd.f32 (!%p1219_p11), %v936_v28, %v935_v34  ;;  %v905_v51 = vmul.f32 (!%p1219_p11), %v1622_v2, %v1622_v2 }
 0x11f   : > { %739 = vst.msk [vmem:[#allocation2 + $0x68] sm:$0xff] %vm484_vm1, %v707_v49  ;;  %755 = vst.msk [vmem:[#allocation2 + $0xe8] sm:$0xff] %vm484_vm1, %v723_v50  ;;  %v1715_v36 = vld [vmem:[#allocation2 + $0xc0] sm:$0xff] (!%p1219_p11)  ;;  %v1717_v37 = vld [vmem:[#allocation2 + $0xc8] sm:$0xff] (!%p1219_p11)  ;;  %v836_v46 = vadd.f32 (!%p1219_p11), %v835_v29, %v834_v35  ;;  %v940_v49 = vsel (!%p1219_p11), %vm484_vm1, %v903_v30, 0.0  ;;  %v839_v50 = vsel (!%p1219_p11), %vm484_vm1, %v1620_v1, 0.0  ;;  %v906_v56 = vmul.f32 (!%p1219_p11), %v1635_v7, %v1635_v7 }
 0x120   : > { %802 = vst.msk [vmem:[%s1496_s25 + $0x40] sm:$0xff] %vm484_vm1, %v1622_v2  ;;  %803 = vst.msk [vmem:[%s1496_s25 + $0x48] sm:$0xff] %vm484_vm1, %v1635_v7  ;;  %v1719_v38 = vld [vmem:[#allocation2 + $0xd0] sm:$0xff]  ;;  %v1734_v42 = vld [vmem:[#allocation2 + $0xd8] sm:$0xff]  ;;  %v939_v52 = vadd.f32 %v938_v39, %v937_v45  ;;  %v942_v54 = vsel %vm484_vm1, %v904_v41, 0.0  ;;  %v841_v55 = vsel %vm484_vm1, %v1622_v2, 0.0  ;;  %v907_v61 = vmul.f32 %v1637_v8, %v1637_v8 }
 0x121   : > { %804 = vst.msk [vmem:[%s1496_s25 + $0x50] sm:$0xff] %vm484_vm1, %v1637_v8  ;;  %805 = vst.msk [vmem:[%s1496_s25 + $0x58] sm:$0xff] %vm484_vm1, %v1639_v9  ;;  %v838_v53 = vadd.f32 %v837_v40, %v836_v46  ;;  %v944_v59 = vsel %vm484_vm1, %v905_v51, 0.0  ;;  %v843_v60 = vsel %vm484_vm1, %v1635_v7, 0.0  ;;  %v946_v0 = vsel %vm484_vm1, %v906_v56, 0.0 }
 0x122   : > { %814 = vst.msk [vmem:[%s1496_s25 + $0xa0] sm:$0xff] %vm484_vm1, %v1687_v27  ;;  %815 = vst.msk [vmem:[%s1496_s25 + $0xa8] sm:$0xff] %vm484_vm1, %v1700_v31  ;;  %v941_v57 = vadd.f32 %v940_v49, %v939_v52  ;;  %v845_v1 = vsel %vm484_vm1, %v1637_v8, 0.0  ;;  %v908_v2 = vmul.f32 %v1639_v9, %v1639_v9  ;;  %v948_v5 = vsel %vm484_vm1, %v907_v61, 0.0 }
 0x123   : > { %v1655_v16 = vld [vmem:[#allocation2 + $0x70] sm:$0xff]  ;;  %816 = vst.msk [vmem:[%s1496_s25 + $0xb0] sm:$0xff] %vm484_vm1, %v1702_v32  ;;  %817 = vst.msk [vmem:[%s1496_s25 + $0xb8] sm:$0xff] %vm484_vm1, %v1704_v33  ;;  %v840_v58 = vadd.f32 %v839_v50, %v838_v53  ;;  %v847_v6 = vsel %vm484_vm1, %v1639_v9, 0.0  ;;  %v913_v40 = vmul.f32 %v1670_v21, %v1670_v21  ;;  %v914_v49 = vmul.f32 %v1672_v22, %v1672_v22 }
 0x124   : > { %v1651_v14 = vld [vmem:[#allocation2 + $0x60] sm:$0xff]  ;;  %808 = vst.msk [vmem:[%s1496_s25 + $0x70] sm:$0xff] %vm484_vm1, %v1655_v16  ;;  %818 = vst.msk [vmem:[%s1496_s25 + $0xc0] sm:$0xff] %vm484_vm1, %v1715_v36  ;;  %v1749_v47 = vld [vmem:[#allocation2 + $0xf0] sm:$0xff]  ;;  %v943_v62 = vadd.f32 %v942_v54, %v941_v57  ;;  %v950_v12 = vsel %vm484_vm1, %v908_v2, 0.0  ;;  %v911_v23 = vmul.f32 %v1655_v16, %v1655_v16  ;;  %v915_v53 = vmul.f32 %v1683_v25, %v1683_v25 }
 0x125   : > { %806 = vst.msk [vmem:[%s1496_s25 + $0x60] sm:$0xff] %vm484_vm1, %v1651_v14  ;;  %v1668_v20 = vld [vmem:[#allocation2 + $0x78] sm:$0xff]  ;;  %819 = vst.msk [vmem:[%s1496_s25 + $0xc8] sm:$0xff] %vm484_vm1, %v1717_v37  ;;  %v1736_v43 = vld [vmem:[#allocation2 + $0xe0] sm:$0xff]  ;;  %v842_v63 = vadd.f32 %v841_v55, %v840_v58  ;;  %v909_v7 = vmul.f32 %v1651_v14, %v1651_v14  ;;  %v849_v8 = vsel %vm484_vm1, %v1651_v14, 0.0  ;;  %v853_v14 = vsel %vm484_vm1, %v1655_v16, 0.0 }
 0x126   : > { %v1653_v15 = vld [vmem:[#allocation2 + $0x68] sm:$0xff]  ;;  %809 = vst.msk [vmem:[%s1496_s25 + $0x78] sm:$0xff] %vm484_vm1, %v1668_v20  ;;  %820 = vst.msk [vmem:[%s1496_s25 + $0xd0] sm:$0xff] %vm484_vm1, %v1719_v38  ;;  %v1751_v48 = vld [vmem:[#allocation2 + $0xf8] sm:$0xff]  ;;  %v945_v3 = vadd.f32 %v944_v59, %v943_v62  ;;  %v912_v30 = vmul.f32 %v1668_v20, %v1668_v20  ;;  %v956_v39 = vsel %vm484_vm1, %v911_v23, 0.0  ;;  %v857_v16 = vsel %vm484_vm1, %v1670_v21, 0.0 }
 0x127   : > { %807 = vst.msk [vmem:[%s1496_s25 + $0x68] sm:$0xff] %vm484_vm1, %v1653_v15  ;;  %v1738_v44 = vld [vmem:[#allocation2 + $0xe8] sm:$0xff]  ;;  %821 = vst.msk [vmem:[%s1496_s25 + $0xd8] sm:$0xff] %vm484_vm1, %v1734_v42  ;;  %v844_v4 = vadd.f32 %v843_v60, %v842_v63  ;;  %v910_v13 = vmul.f32 %v1653_v15, %v1653_v15  ;;  %v952_v19 = vsel %vm484_vm1, %v909_v7, 0.0  ;;  %v851_v9 = vsel %vm484_vm1, %v1653_v15, 0.0 }
 0x128   : > { %822 = vst.msk [vmem:[%s1496_s25 + $0xe0] sm:$0xff] %vm484_vm1, %v1736_v43  ;;  %823 = vst.msk [vmem:[%s1496_s25 + $0xe8] sm:$0xff] %vm484_vm1, %v1738_v44  ;;  %v947_v10 = vadd.f32 %v946_v0, %v945_v3  ;;  %v855_v15 = vsel %vm484_vm1, %v1668_v20, 0.0  ;;  %v958_v46 = vsel %vm484_vm1, %v912_v30, 0.0  ;;  %v960_v52 = vsel %vm484_vm1, %v913_v40, 0.0 }
 0x129   : > { %824 = vst.msk [vmem:[%s1496_s25 + $0xf0] sm:$0xff] %vm484_vm1, %v1749_v47  ;;  %825 = vst.msk [vmem:[%s1496_s25 + $0xf8] sm:$0xff] %vm484_vm1, %v1751_v48  ;;  %v846_v11 = vadd.f32 %v845_v1, %v844_v4  ;;  %v954_v29 = vsel %vm484_vm1, %v910_v13, 0.0  ;;  %v859_v20 = vsel %vm484_vm1, %v1672_v22, 0.0  ;;  %v962_v56 = vsel %vm484_vm1, %v914_v49, 0.0 }
 0x12a   : > { %v949_v17 = vadd.f32 %v948_v5, %v947_v10  ;;  %v861_v21 = vsel %vm484_vm1, %v1683_v25, 0.0  ;;  %v916_v57 = vmul.f32 %v1685_v26, %v1685_v26  ;;  %v964_v60 = vsel %vm484_vm1, %v915_v53, 0.0 }
 0x12b   : > { %v848_v18 = vadd.f32 %v847_v6, %v846_v11  ;;  %v863_v22 = vsel %vm484_vm1, %v1685_v26, 0.0  ;;  %v917_v61 = vmul.f32 %v1687_v27, %v1687_v27  ;;  %v865_v25 = vsel %vm484_vm1, %v1687_v27, 0.0 }
 0x12c   : > { %v951_v24 = vadd.f32 %v950_v12, %v949_v17  ;;  %v966_v0 = vsel %vm484_vm1, %v916_v57, 0.0  ;;  %v918_v1 = vmul.f32 %v1700_v31, %v1700_v31  ;;  %v867_v26 = vsel %vm484_vm1, %v1700_v31, 0.0 }
 0x12d   : > { %v850_v28 = vadd.f32 %v849_v8, %v848_v18  ;;  %v968_v4 = vsel %vm484_vm1, %v917_v61, 0.0  ;;  %v919_v5 = vmul.f32 %v1702_v32, %v1702_v32  ;;  %v869_v27 = vsel %vm484_vm1, %v1702_v32, 0.0 }
 0x12e   : > { %v953_v34 = vadd.f32 %v952_v19, %v951_v24  ;;  %v970_v10 = vsel %vm484_vm1, %v918_v1, 0.0  ;;  %v920_v11 = vmul.f32 %v1704_v33, %v1704_v33  ;;  %v871_v31 = vsel %vm484_vm1, %v1704_v33, 0.0 }
 0x12f   : > { %v852_v35 = vadd.f32 %v851_v9, %v850_v28  ;;  %v972_v13 = vsel %vm484_vm1, %v919_v5, 0.0  ;;  %v921_v17 = vmul.f32 %v1715_v36, %v1715_v36  ;;  %v873_v32 = vsel %vm484_vm1, %v1715_v36, 0.0 }
 0x130   : > { %v955_v41 = vadd.f32 %v954_v29, %v953_v34  ;;  %v974_v9 = vsel %vm484_vm1, %v920_v11, 0.0  ;;  %v922_v23 = vmul.f32 %v1717_v37, %v1717_v37  ;;  %v875_v33 = vsel %vm484_vm1, %v1717_v37, 0.0 }
 0x131   : > { %v854_v45 = vadd.f32 %v853_v14, %v852_v35  ;;  %v976_v29 = vsel %vm484_vm1, %v921_v17, 0.0  ;;  %v923_v14 = vmul.f32 %v1719_v38, %v1719_v38  ;;  %v877_v36 = vsel %vm484_vm1, %v1719_v38, 0.0 }
 0x132   : > { %v957_v50 = vadd.f32 %v956_v39, %v955_v41  ;;  %v978_v35 = vsel %vm484_vm1, %v922_v23, 0.0  ;;  %v924_v39 = vmul.f32 %v1734_v42, %v1734_v42  ;;  %v879_v37 = vsel %vm484_vm1, %v1734_v42, 0.0 }
 0x133   : > { %v856_v51 = vadd.f32 %v855_v15, %v854_v45  ;;  %v980_v41 = vsel %vm484_vm1, %v923_v14, 0.0  ;;  %v925_v45 = vmul.f32 %v1736_v43, %v1736_v43  ;;  %v881_v38 = vsel %vm484_vm1, %v1736_v43, 0.0 }
 0x134   : > { %v959_v54 = vadd.f32 %v958_v46, %v957_v50  ;;  %v982_v49 = vsel %vm484_vm1, %v924_v39, 0.0  ;;  %v926_v50 = vmul.f32 %v1738_v44, %v1738_v44  ;;  %v883_v42 = vsel %vm484_vm1, %v1738_v44, 0.0 }
 0x135   : > { %v858_v55 = vadd.f32 %v857_v16, %v856_v51  ;;  %v927_v53 = vmul.f32 %v1749_v47, %v1749_v47  ;;  %v885_v43 = vsel %vm484_vm1, %v1749_v47, 0.0  ;;  %v887_v44 = vsel %vm484_vm1, %v1751_v48, 0.0 }
 0x136   : > { %v961_v58 = vadd.f32 %v960_v52, %v959_v54 }
 0x137   : > { %v860_v59 = vadd.f32 %v859_v20, %v858_v55  ;;  %v984_v20 = vsel %vm484_vm1, %v925_v45, 0.0 }
 0x138   : > { %v963_v62 = vadd.f32 %v962_v56, %v961_v58  ;;  %v986_v56 = vsel %vm484_vm1, %v926_v50, 0.0 }
 0x139   : > { %v862_v63 = vadd.f32 %v861_v21, %v860_v59  ;;  %v928_v21 = vmul.f32 %v1751_v48, %v1751_v48  ;;  %v988_v59 = vsel %vm484_vm1, %v927_v53, 0.0 }
 0x13a   : > { %v965_v2 = vadd.f32 %v964_v60, %v963_v62 }
 0x13b   : > { %v864_v3 = vadd.f32 %v863_v22, %v862_v63  ;;  %v990_v61 = vsel %vm484_vm1, %v928_v21, 0.0 }
 0x13c   : > { %v967_v6 = vadd.f32 %v966_v0, %v965_v2 }
 0x13d   : > { %v866_v7 = vadd.f32 %v865_v25, %v864_v3 }
 0x13e   : > { %v969_v12 = vadd.f32 %v968_v4, %v967_v6 }
 0x13f   : > { %v868_v8 = vadd.f32 %v867_v26, %v866_v7 }
 0x140   : > { %v971_v18 = vadd.f32 %v970_v10, %v969_v12 }
 0x141   : > { %v870_v19 = vadd.f32 %v869_v27, %v868_v8 }
 0x142   : > { %v973_v24 = vadd.f32 %v972_v13, %v971_v18 }
 0x143   : > { %v872_v28 = vadd.f32 %v871_v31, %v870_v19 }
 0x144   : > { %v975_v30 = vadd.f32 %v974_v9, %v973_v24 }
 0x145   : > { %v874_v34 = vadd.f32 %v873_v32, %v872_v28 }
 0x146   : > { %v977_v15 = vadd.f32 %v976_v29, %v975_v30 }
 0x147   : > { %v876_v40 = vadd.f32 %v875_v33, %v874_v34 }
 0x148   : > { %v979_v46 = vadd.f32 %v978_v35, %v977_v15 }
 0x149   : > { %v878_v16 = vadd.f32 %v877_v36, %v876_v40 }
 0x14a   : > { %v981_v51 = vadd.f32 %v980_v41, %v979_v46 }
 0x14b   : > { %v880_v52 = vadd.f32 %v879_v37, %v878_v16 }
 0x14c   : > { %v983_v54 = vadd.f32 %v982_v49, %v981_v51 }
 0x14d   : > { %v882_v55 = vadd.f32 %v881_v38, %v880_v52 }
 0x14e   : > { %v985_v57 = vadd.f32 %v984_v20, %v983_v54 }
 0x14f   : > { %v884_v58 = vadd.f32 %v883_v42, %v882_v55 }
 0x150   : > { %v987_v60 = vadd.f32 %v986_v56, %v985_v57 }
 0x151   : > { %v886_v22 = vadd.f32 %v885_v43, %v884_v58 }
 0x152   : > { %v989_v62 = vadd.f32 %v988_v59, %v987_v60 }
 0x153   : > { %v888_v63 = vadd.f32 %v887_v44, %v886_v22 }
 0x154   : > { %v991_v47 = vadd.f32 %v990_v61, %v989_v62 }
 0x155   : > { %v889_v0 = vrot.slane %v888_v63, 4 }
 0x156   : > { %v992_v1 = vrot.slane %v991_v47, 4 }
 0x157   : > { %v890_v25 = vadd.f32 %v889_v0, %v888_v63 }
 0x158   : > { %v993_v3 = vadd.f32 %v992_v1, %v991_v47 }
 0x159   : > { %v891_v2 = vrot.slane %v890_v25, 2 }
 0x15a   : > { %v994_v26 = vrot.slane %v993_v3, 2 }
 0x15b   : > { %v892_v4 = vadd.f32 %v891_v2, %v890_v25 }
 0x15c   : > { %v995_v6 = vadd.f32 %v994_v26, %v993_v3 }
 0x15d   : > { %v893_v5 = vrot.slane %v892_v4, 1 }
 0x15e   : > { %v996_v7 = vrot.slane %v995_v6, 1 }
 0x15f   : > { %v894_v48 = vadd.f32 %v893_v5, %v892_v4 }
 0x160   : > { %v997_v10 = vadd.f32 %v996_v7, %v995_v6 }
 0x161   : > { %896 = vst.msk [vmem:[%s1503_s22] sm:$0x1] %vm895_vm2, %v894_v48 }
 0x162   : > { %998 = vst.msk [vmem:[%s1503_s22 + $0x1] sm:$0x1] %vm895_vm2, %v997_v10 }
 0x163 PF: > { %s14_s18 = sadd.s32 1, %s1411_s18   ;;  %s1913_s19 = sld [smem:[#allocation3_spill]] }
 0x164   : > { %p11_p12 = scmp.ge.s32.totalorder %s14_s18, 56   ;;  %s1914_s20 = sld [smem:[#allocation4_spill]] }
 0x165   : > { %s1915_s21 = sld [smem:[#allocation5_spill]]  ;;  %s1916_s12 = smov %s1399_s15 }
 0x166   : > { %s1917_s13 = smov %s1403_s16  ;;  %s1918_s14 = smov %s1407_s17 }
 0x167   :  { %13 = sbr.rel (!%p11_p12) target bundleno = 4 (0x4), region = 81 }
 0x169   : > { %s1919_s15 = smov %s1913_s19 }
 0x16a   : > { %s1920_s16 = smov %s1914_s20 }
 0x16b   : > { %s1921_s17 = smov %s1915_s21 }

// kernel: tile.27
= control target key start
LH: loop header
LB: loop body
LE: loop exit
PB: predicated region body
PF: predicated region fallthrough
CT: control target
= control target key end

     0   :  { %vm33_vm0 = vcmask 1045508   ;;  %s59_s18 = smov 48  ;;  %s74_s19 = smov 48  ;;  %vm35_vm1 = vcmask 261120   ;;  %vm50_vm2 = vcmask 1048320   ;;  %vm65_vm3 = vcmask 785920   ;;  %s162_s0 = inlined_call_operand.vmem [shape: f32[2,3,4,32], index: 0, kind: input, shape index: {}]   ;;  %s163_s1 = inlined_call_operand.vmem [shape: f32[2,3,128], index: 1, kind: output, shape index: {}]  }
   0x1   :  { %v108_v0 = vld [vmem:[%s162_s0 + $0x14] sm:$0xf]  ;;  %v109_v1 = vld [vmem:[%s162_s0 + $0x10] sm:$0xf]  ;;  %v110_v2 = vld [vmem:[%s162_s0 + $0xc] sm:$0xf] }
   0x2   :  { %8 = vst [vmem:[#allocation1 + $0x28] sm:$0xf] %v108_v0  ;;  %13 = vst [vmem:[#allocation1 + $0x20] sm:$0xf] %v109_v1  ;;  %v111_v3 = vld [vmem:[%s162_s0 + $0x8] sm:$0xf] }
   0x3   :  { %18 = vst [vmem:[#allocation1 + $0x18] sm:$0xf] %v110_v2  ;;  %v112_v4 = vld [vmem:[%s162_s0 + $0x4] sm:$0xf]  ;;  %v28_v5 = vld [vmem:[%s162_s0] sm:$0xf] }
   0x4   :  { %23 = vst [vmem:[#allocation1 + $0x10] sm:$0xf] %v111_v3  ;;  %27 = vst [vmem:[#allocation1 + $0x8] sm:$0xf] %v112_v4  ;;  %s44_s0 = smov 48  ;;  %s31_s20 = smov 48 }
   0x5   :  { %29 = vst [vmem:[#allocation1] sm:$0xf] %v28_v5  ;;  %s118_s21 = smov 96   ;;  %s119_s22 = smov 32   ;;  %vm80_vm4 = vcmask 523520  }
   0x6   :  { %s120_s23 = smov 64  }
   0xc   :  { %v42_v6 = vld [vmem:[#allocation1 + $0x3] ss:$8 sm:$0xf]   ;;  %v57_v9 = vld [vmem:[#allocation1 + $0x2] ss:$8 sm:$0xf]  }
   0xd   :  { %v45_v7 = vld [vmem:[#allocation1 + $0x3] ss:$8 sm:%s44_s0]   ;;  %v60_v10 = vld [vmem:[#allocation1 + $0x2] ss:$8 sm:%s59_s18]   ;;  %v75_v12 = vld [vmem:[#allocation1 + $0x1] ss:$8 sm:%s74_s19]  }
   0xe   :  { %v47_v8 = vsel %vm33_vm0, %v45_v7, %v42_v6  ;;  %v72_v11 = vld [vmem:[#allocation1 + $0x1] ss:$8 sm:$0xf]   ;;  %v62_v13 = vsel %vm33_vm0, %v60_v10, %v57_v9  ;;  %v30_v15 = vld [vmem:[#allocation1] ss:$8 sm:$0xf]  }
   0xf   :  { %48 = vrot.lane.b32.xlu0 %v47_v8, %s118_s21  ;;  %v77_v14 = vsel %vm33_vm0, %v75_v12, %v72_v11  ;;  %v32_v16 = vld [vmem:[#allocation1] ss:$8 sm:%s31_s20]  }
  0x10   :  { %78 = vrot.lane.b32.xlu1 %v77_v14, %s119_s22  ;;  %v34_v17 = vsel %vm33_vm0, %v32_v16, %v30_v15 }
  0x11   :  { %36 = vst.msk [vmem:[#allocation0] sm:$0x3] %vm35_vm1, %v34_v17   ;;  %38 = vst.msk [vmem:[#allocation0 + $0x6] sm:$0xc] %vm35_vm1, %v34_v17  }
  0x12   :  { %40 = vst.msk [vmem:[#allocation0 + $0xc] sm:$0x30] %vm35_vm1, %v34_v17  }
  0x13   :  { %63 = vrot.lane.b32.xlu0 %v62_v13, %s120_s23 }
  0x81   :  { %v49_v18 = vpop.permute.xlu0 %48  }
  0x82   :  { %51 = vst.msk [vmem:[#allocation0] sm:$0x3] %vm50_vm2, %v49_v18   ;;  %53 = vst.msk [vmem:[#allocation0 + $0x6] sm:$0xc] %vm50_vm2, %v49_v18   ;;  %v79_v19 = vpop.permute.xlu1 %78  }
  0x83   :  { %55 = vst.msk [vmem:[#allocation0 + $0xc] sm:$0x30] %vm50_vm2, %v49_v18  }
  0x85   :  { %v64_v20 = vpop.permute.xlu0 %63  }
  0x86   :  { %66 = vst.msk [vmem:[#allocation0] sm:$0x3] %vm65_vm3, %v64_v20   ;;  %68 = vst.msk [vmem:[#allocation0 + $0x6] sm:$0xc] %vm65_vm3, %v64_v20  }
  0x87   :  { %70 = vst.msk [vmem:[#allocation0 + $0xc] sm:$0x30] %vm65_vm3, %v64_v20  }
  0x88   :  { %81 = vst.msk [vmem:[#allocation0] sm:$0x3] %vm80_vm4, %v79_v19   ;;  %83 = vst.msk [vmem:[#allocation0 + $0x6] sm:$0xc] %vm80_vm4, %v79_v19  }
  0x89   :  { %85 = vst.msk [vmem:[#allocation0 + $0xc] sm:$0x30] %vm80_vm4, %v79_v19  }
  0x8f   :  { %v89_v21 = vld [vmem:[#allocation0] sm:$0x3]  ;;  %v93_v22 = vld [vmem:[#allocation0 + $0x8] sm:$0x3] }
  0x90   :  { %v98_v23 = vld [vmem:[#allocation0 + $0x10] sm:$0x3]  ;;  %91 = vst [vmem:[%s163_s1] sm:$0x3] %v89_v21  ;;  %113 = vst [vmem:[%s163_s1 + $0x2] sm:$0x3] %v93_v22 }
  0x91   :  { %114 = vst [vmem:[%s163_s1 + $0x4] sm:$0x3] %v98_v23 }

// kernel: _lambda_.6
= control target key start
LH: loop header
LB: loop body
LE: loop exit
PB: predicated region body
PF: predicated region fallthrough
CT: control target
= control target key end

     0   :  { %v323_v0 = vmov 0.0|0.0   ;;  %vm324_vm0 = vmmov 0   ;;  %v325_v4 = vmov 0.0   ;;  %vm25_vm1 = vcmask 261120   ;;  %s326_s6 = smov 96   ;;  %s327_s7 = smov 64   ;;  %s392_s1 = inlined_call_operand.vmem [shape: f32[32,4], index: 1, kind: input, shape index: {}]   ;;  %s393_s0 = inlined_call_operand.vmem [shape: f32[2,32], index: 0, kind: input, shape index: {}]   ;;  %s394_s4 = inlined_call_operand.vmem [shape: f32[4,96], index: 4, kind: input, shape index: {}]   ;;  %s395_s2 = inlined_call_operand.vmem [shape: f32[1,4], index: 2, kind: input, shape index: {}]   ;;  %s396_s3 = inlined_call_operand.vmem [shape: f32[1,4], index: 3, kind: input, shape index: {}]   ;;  %s397_s5 = inlined_call_operand.vmem [shape: f32[2,96], index: 5, kind: output, shape index: {}]  }
   0x1   :  { %301 = vmatprep.subr.bf16.mxu0 %v323_v0  ;;  %v21_v1 = vld [vmem:[%s392_s1] sm:$0xff]  ;;  %v22_v2 = vld [vmem:[%s392_s1 + $0x8] sm:$0xff]  ;;  %v23_v3 = vld [vmem:[%s392_s1 + $0x10] sm:$0xff]  ;;  %293 = vmatprep.mubr.msk.f32.mxu0 %vm324_vm0, %v325_v4  ;;  %vm144_vm2 = vcmask 1043456   ;;  %vm99_vm3 = vcmask 25600   ;;  %vm140_vm4 = vcmask 31744  }
   0x2   :  { %v302_v5 = vpack.c.bf16 %v22_v2, %v21_v1  ;;  %v24_v6 = vld [vmem:[%s392_s1 + $0x18] sm:$0xff]  ;;  %296 = vmatprep.subr.mxu1 %v325_v4  ;;  %298 = vmatprep.mubr.msk.f32.mxu1 %vm324_vm0, %v325_v4  ;;  %v20_v8 = vld [vmem:[%s393_s0] sm:$0x3]  ;;  %vm265_vm5 = vcmask 523264   ;;  %vm267_vm6 = vcmask 779264  }
   0x3   :  { %v305_v7 = vpack.c.bf16 %v24_v6, %v23_v3  ;;  %v139_v9 = vld [vmem:[%s394_s4] sm:$0xf] }
   0x4   :  { %303 = vmatpush3.bf16.msra.mxu0 %v302_v5  ;;  %297 = vmatpush3.msk.msra.mxu1 %vm144_vm2, %v139_v9  ;;  %v274_v32 = vld [vmem:[%s395_s2] ss:$0 sm:$0xff]  ;;  %s328_s2 = smov 32  }
   0x5   :  { %304 = vmatprep.subr.bf16.mxu0 %v323_v0  ;;  %v275_v34 = vld [vmem:[%s396_s3] ss:$0 sm:$0xff] }
   0x8   :  { %306 = vmatpush3.bf16.msra.mxu0 %v305_v7 }
   0xb   :  { %294 = vmatmul.mubr.msk.f32.vlgmr.msra.gmra.mrb[0].mxu0 %vm25_vm1, %v20_v8 }
  0xde   :  { %v95_v10 = vpop.f32.mrb[0].mxu0 }
  0xdf   :  { %v100_v11 = vsel %vm99_vm3, %v95_v10, 0.0  ;;  %v295_v12 = vpop.f32.mrb[1].mxu0 }
  0xe0   :  { %v101_v13 = vrot.slane %v100_v11, 4 }
  0xe2   :  { %v102_v14 = vadd.f32 %v101_v13, %v100_v11 }
  0xe4   :  { %v103_v15 = vrot.slane %v102_v14, 2 }
  0xe6   :  { %v104_v16 = vadd.f32 %v103_v15, %v102_v14 }
  0xe8   :  { %v105_v17 = vrot.slane %v104_v16, 1 }
  0xea   :  { %v106_v18 = vadd.f32 %v105_v17, %v104_v16 }
  0xec   :  { %v108_v19 = vmul.f32 0.5, %v106_v18 }
  0xee   :  { %v109_v20 = vsub.f32 %v95_v10, %v108_v19 }
  0xf0   :  { %v110_v21 = vmul.f32 %v109_v20, %v109_v20 }
  0xf2   :  { %v111_v22 = vsel %vm99_vm3, %v110_v21, 0.0 }
  0xf3   :  { %v112_v23 = vrot.slane %v111_v22, 4 }
  0xf5   :  { %v113_v24 = vadd.f32 %v112_v23, %v111_v22 }
  0xf7   :  { %v114_v25 = vrot.slane %v113_v24, 2 }
  0xf9   :  { %v115_v26 = vadd.f32 %v114_v25, %v113_v24 }
  0xfb   :  { %v116_v27 = vrot.slane %v115_v26, 1 }
  0xfd   :  { %v117_v28 = vadd.f32 %v116_v27, %v115_v26 }
  0xff   :  { %v118_v29 = vmul.f32 0.5, %v117_v28 }
 0x101   :  { %v119_v30 = vadd.f32 1e-05, %v118_v29 }
 0x103   :  { %313 = vrsqrt.f32 %v119_v30 }
 0x10d   :  { %v314_v31 = vpop.eup %313 }
 0x10e   :  { %v121_v33 = vmul.f32 %v314_v31, %v109_v20 }
 0x110   :  { %v129_v35 = vmul.f32 %v274_v32, %v121_v33 }
 0x112   :  { %v137_v36 = vadd.f32 %v275_v34, %v129_v35 }
 0x114   :  { %v138_v37 = vmax.f32 %v137_v36, 0.0 }
 0x116   :  { %299 = vmatmul.mubr.msk.f32.vlgmr.msra.gmra.mrb[0].mxu1 %vm140_vm4, %v138_v37 }
 0x1e9   :  { %v214_v38 = vpop.f32.mrb[0].mxu1 }
 0x1ea   :  { %219 = vrot.lane.b32.xlu0 %v214_v38, %s326_s6  ;;  %v300_v39 = vpop.f32.mrb[1].mxu1 }
 0x1ee   :  { %223 = vrot.lane.b32.xlu0 %v214_v38, %s327_s7 }
 0x25c   :  { %v220_v40 = vpop.permute.xlu0 %219 }
 0x25d   :  { %v222_v41 = vmax.f32 %v214_v38, %v220_v40 }
 0x260   :  { %v224_v42 = vpop.permute.xlu0 %223 }
 0x261   :  { %v226_v43 = vmax.f32 %v222_v41, %v224_v42 }
 0x263   :  { %v227_v44 = vsub.f32 %v214_v38, %v226_v43  ;;  %231 = vrot.lane.b32.xlu1 %v226_v43, %s328_s2 }
 0x265   :  { %v228_v53 = vmul.f32 1.442695, %v227_v44 }
 0x267   :  { %237 = vrot.lane.b32.xlu1 %v226_v43, %s327_s7 }
 0x2d5   :  { %v232_v45 = vpop.permute.xlu1 %231 }
 0x2d6   :  { %v234_v46 = vsub.f32 %v214_v38, %v232_v45 }
 0x2d8   :  { %v235_v47 = vmul.f32 1.442695, %v234_v46 }
 0x2d9   :  { %v238_v48 = vpop.permute.xlu1 %237 }
 0x2da   :  { %315 = vpow2.f32 %v235_v47  ;;  %v240_v49 = vsub.f32 %v214_v38, %v238_v48 }
 0x2dc   :  { %v241_v50 = vmul.f32 1.442695, %v240_v49 }
 0x2de   :  { %317 = vpow2.f32 %v241_v50 }
 0x2df   :  { %319 = vpow2.f32 %v228_v53 }
 0x2e4   :  { %v316_v51 = vpop.eup %315 }
 0x2e5   :  { %244 = vrot.lane.b32.xlu0 %v316_v51, %s326_s6 }
 0x2e8   :  { %v318_v52 = vpop.eup %317 }
 0x2e9   :  { %249 = vrot.lane.b32.xlu1 %v318_v52, %s327_s7  ;;  %v320_v55 = vpop.eup %319 }
 0x357   :  { %v245_v54 = vpop.permute.xlu0 %244 }
 0x358   :  { %v247_v56 = vadd.f32 %v320_v55, %v245_v54 }
 0x35b   :  { %v250_v57 = vpop.permute.xlu1 %249 }
 0x35c   :  { %v252_v58 = vadd.f32 %v250_v57, %v247_v56 }
 0x35e   :  { %321 = vrcp.f32 %v252_v58 }
 0x368   :  { %v322_v59 = vpop.eup %321 }
 0x369   :  { %260 = vrot.lane.b32.xlu1 %v322_v59, %s327_s7  ;;  %256 = vrot.lane.b32.xlu0 %v322_v59, %s328_s2  ;;  %v254_v60 = vmul.f32 %v322_v59, %v320_v55 }
 0x3db   :  { %v261_v61 = vpop.permute.xlu1 %260  ;;  %v257_v62 = vpop.permute.xlu0 %256 }
 0x3dc   :  { %v263_v63 = vmul.f32 %v318_v52, %v261_v61  ;;  %v259_v0 = vmul.f32 %v316_v51, %v257_v62 }
 0x3de   :  { %v264_v1 = vsel %vm25_vm1, %v254_v60, %v259_v0 }
 0x3df   :  { %v266_v2 = vsel %vm265_vm5, %v264_v1, %v263_v63 }
 0x3e0   :  { %268 = vst.msk [vmem:[%s397_s5] sm:$0x3] %vm267_vm6, %v266_v2 }

// kernel: _lambda_.7
= control target key start
LH: loop header
LB: loop body
LE: loop exit
PB: predicated region body
PF: predicated region fallthrough
CT: control target
= control target key end

     0   :  { %s862_s15 = smov 0   ;;  %s864_s16 = smov 0   ;;  %s1119_s0 = inlined_call_operand.vmem [shape: f32[3,2,64,128], index: 0, kind: input, shape index: {}]   ;;  %s1120_s1 = inlined_call_operand.vmem [shape: f32[3,128], index: 1, kind: input, shape index: {}]   ;;  %s1121_s2 = inlined_call_operand.vmem [shape: f32[3,128], index: 2, kind: input, shape index: {}]   ;;  %s1122_s3 = inlined_call_operand.vmem [shape: f32[2,3,128], index: 3, kind: input, shape index: {}]   ;;  %s1123_s4 = inlined_call_operand.vmem [shape: f32[2,64,128], index: 4, kind: output, shape index: {}]  }
   0x1   :  { %s866_s17 = smov 0   ;;  %s868_s18 = smov 0  }
   0x2   :  { %s870_s19 = smov 0  }
   0x3 LB: > { %s26_s20 = sadd.s32 1, %s830_s18  ;;  %p42_p1 = scmp.ne.s32.totalorder %s822_s16, %s818_s15  ;;  %s834_s19 = sphi %s870_s19, %s14_s19   ;;  %s830_s18 = sphi %s868_s18, %s1127_s18   ;;  %s826_s17 = sphi %s866_s17, %s1126_s17   ;;  %s822_s16 = sphi %s864_s16, %s1125_s16   ;;  %s818_s15 = sphi %s862_s15, %s1124_s15  }
   0x4   : > { %p28_p0 = scmp.ge.s32.totalorder %s26_s20, 2  ;;  %p43_p2 = scmp.eq.s32.totalorder %s834_s19, 0 }
   0x5   : > { %s35_s22 = sadd.s32 1, %s822_s16  ;;  %p739_p5 = scmp.ge.s32.totalorder %s834_s19, 2 }
   0x6   : > { %s1129_s20 = smov (%p28_p0, %s26_s20), 0  ;;  %p44_p3 = por %p43_p2, %p42_p1 }
   0x7   : > { %s30_s21 = ssub.s32 %s830_s18, %s1129_s20  ;;  %170 = sbr.rel (%p739_p5) target bundleno = 31 (0x1f), region = 24 }
   0x8   : > { %p33_p4 = scmp.eq.s32.totalorder %s30_s21, 0 }
   0xa   : > { %s897_s23 = scalar_select %p33_p4, %s822_s16, %s35_s22  }
   0xe   : > { %173 = sbr.rel (!%p44_p3) target bundleno = 31 (0x1f), region = 28  ;;  %s175_s24 = sand.u32 (%p44_p3), 1, %s822_s16  }
   0xf   : > { %s751_s25 = sshll.u32 (%p44_p3), %s830_s18, 6  ;;  %s753_s26 = smul.u32 (%p44_p3), 192, %s175_s24 }
  0x10   : > { %s905_s29 = scalar_lea.vmem (%p44_p3), %s1119_s0, %s751_s25 }
  0x11   : > { %v256_v0 = vld [vmem:[%s905_s29] sm:$0xff] (%p44_p3)  ;;  %v258_v1 = vld [vmem:[%s905_s29 + $0x8] sm:$0xff] (%p44_p3)  ;;  %v260_v2 = vld [vmem:[%s905_s29 + $0x10] sm:$0xff] (%p44_p3)  ;;  %s913_s30 = scalar_lea.vmem (%p44_p3), [#allocation2], %s753_s26 }
  0x12   : > { %v262_v3 = vld [vmem:[%s905_s29 + $0x18] sm:$0xff] (%p44_p3)  ;;  %v264_v4 = vld [vmem:[%s905_s29 + $0x20] sm:$0xff] (%p44_p3)  ;;  %v266_v5 = vld [vmem:[%s905_s29 + $0x28] sm:$0xff] (%p44_p3)  ;;  %257 = vst [vmem:[%s913_s30] sm:$0xff] (%p44_p3), %v256_v0 }
  0x13   : > { %259 = vst [vmem:[%s913_s30 + $0x8] sm:$0xff] (%p44_p3), %v258_v1  ;;  %261 = vst [vmem:[%s913_s30 + $0x10] sm:$0xff] (%p44_p3), %v260_v2  ;;  %v268_v6 = vld [vmem:[%s905_s29 + $0x30] sm:$0xff] (%p44_p3)  ;;  %v270_v7 = vld [vmem:[%s905_s29 + $0x38] sm:$0xff] (%p44_p3) }
  0x14   : > { %263 = vst [vmem:[%s913_s30 + $0x18] sm:$0xff] (%p44_p3), %v262_v3  ;;  %265 = vst [vmem:[%s913_s30 + $0x20] sm:$0xff] (%p44_p3), %v264_v4  ;;  %v272_v8 = vld [vmem:[%s905_s29 + $0x80] sm:$0xff] (%p44_p3)  ;;  %v274_v9 = vld [vmem:[%s905_s29 + $0x88] sm:$0xff] (%p44_p3) }
  0x15   : > { %267 = vst [vmem:[%s913_s30 + $0x28] sm:$0xff] %v266_v5  ;;  %269 = vst [vmem:[%s913_s30 + $0x30] sm:$0xff] %v268_v6  ;;  %v276_v10 = vld [vmem:[%s905_s29 + $0x90] sm:$0xff]  ;;  %v278_v11 = vld [vmem:[%s905_s29 + $0x98] sm:$0xff] }
  0x16   : > { %271 = vst [vmem:[%s913_s30 + $0x38] sm:$0xff] %v270_v7  ;;  %273 = vst [vmem:[%s913_s30 + $0x40] sm:$0xff] %v272_v8  ;;  %v280_v12 = vld [vmem:[%s905_s29 + $0xa0] sm:$0xff]  ;;  %v282_v13 = vld [vmem:[%s905_s29 + $0xa8] sm:$0xff] }
  0x17   : > { %275 = vst [vmem:[%s913_s30 + $0x48] sm:$0xff] %v274_v9  ;;  %277 = vst [vmem:[%s913_s30 + $0x50] sm:$0xff] %v276_v10  ;;  %v284_v14 = vld [vmem:[%s905_s29 + $0xb0] sm:$0xff]  ;;  %v286_v15 = vld [vmem:[%s905_s29 + $0xb8] sm:$0xff] }
  0x18   : > { %279 = vst [vmem:[%s913_s30 + $0x58] sm:$0xff] %v278_v11  ;;  %281 = vst [vmem:[%s913_s30 + $0x60] sm:$0xff] %v280_v12  ;;  %v288_v16 = vld [vmem:[%s905_s29 + $0x100] sm:$0xff]  ;;  %v290_v17 = vld [vmem:[%s905_s29 + $0x108] sm:$0xff] }
  0x19   : > { %283 = vst [vmem:[%s913_s30 + $0x68] sm:$0xff] %v282_v13  ;;  %285 = vst [vmem:[%s913_s30 + $0x70] sm:$0xff] %v284_v14  ;;  %v292_v18 = vld [vmem:[%s905_s29 + $0x110] sm:$0xff]  ;;  %v294_v19 = vld [vmem:[%s905_s29 + $0x118] sm:$0xff] }
  0x1a   : > { %287 = vst [vmem:[%s913_s30 + $0x78] sm:$0xff] %v286_v15  ;;  %289 = vst [vmem:[%s913_s30 + $0x80] sm:$0xff] %v288_v16  ;;  %v296_v20 = vld [vmem:[%s905_s29 + $0x120] sm:$0xff]  ;;  %v298_v21 = vld [vmem:[%s905_s29 + $0x128] sm:$0xff] }
  0x1b   : > { %291 = vst [vmem:[%s913_s30 + $0x88] sm:$0xff] %v290_v17  ;;  %293 = vst [vmem:[%s913_s30 + $0x90] sm:$0xff] %v292_v18  ;;  %v300_v22 = vld [vmem:[%s905_s29 + $0x130] sm:$0xff]  ;;  %v302_v23 = vld [vmem:[%s905_s29 + $0x138] sm:$0xff] }
  0x1c   : > { %295 = vst [vmem:[%s913_s30 + $0x98] sm:$0xff] %v294_v19  ;;  %297 = vst [vmem:[%s913_s30 + $0xa0] sm:$0xff] %v296_v20 }
  0x1d   : > { %299 = vst [vmem:[%s913_s30 + $0xa8] sm:$0xff] %v298_v21  ;;  %301 = vst [vmem:[%s913_s30 + $0xb0] sm:$0xff] %v300_v22 }
  0x1e   : > { %303 = vst [vmem:[%s913_s30 + $0xb8] sm:$0xff] %v302_v23 }
  0x1f PF: > { %p742_p6 = scmp.ge.s32.totalorder %s834_s19, 1  ;;  %p315_p7 = scmp.lt.s32.totalorder %s834_s19, 3 }
  0x21   : > { %p316_p8 = pnand %p742_p6, %p315_p7 }
  0x22   : > { %s322_s5 = sand.u32 (!%p316_p8), 1, %s818_s15   ;;  %p356_p9 = scmp.lt.s32.totalorder (!%p316_p8), %s826_s17, 1  ;;  %v746_v24 = vld.sshfl [vmem:[%s1120_s1] sm:$0x13 pattern:$0x75316420] (!%p316_p8)  ;;  %v407_v25 = vlaneseq (!%p316_p8) }
  0x23   : > { %319 = sbr.rel (%p316_p8) target bundleno = 83 (0x53), region = 70  ;;  %v836_v26 = vmov (!%p316_p8), 1966171168   ;;  %v403_v30 = vcombine.high (!%p316_p8), %v746_v24, %v746_v24 }
  0x24   : > { %s754_s8 = smul.u32 (!%p316_p8), 192, %s322_s5  ;;  %v405_v27 = vunpack.c.l.s4 (!%p316_p8), %v836_v26  ;;  %v408_v28 = vshrl.u32 (!%p316_p8), %v407_v25, 7  ;;  %v747_v29 = vld.sshfl [vmem:[%s1121_s2] sm:$0x13 pattern:$0x75316420] (!%p316_p8) }
  0x25   : > { %v428_v32 = vcombine.high (!%p316_p8), %v747_v29, %v747_v29 }
  0x26   : > { %v406_v31 = vunpack.c.0.s8 (!%p316_p8), %v405_v27  ;;  %v471_v35 = vsub.s32 (!%p316_p8), 0, %v408_v28  ;;  %s974_s15 = scalar_lea.vmem (!%p316_p8), [#allocation2], %s754_s8 }
  0x27   : > { %v370_v41 = vld [vmem:[%s974_s15] sm:$0xff] (!%p316_p8)  ;;  %v371_v49 = vld [vmem:[%s974_s15 + $0x8] sm:$0xff] (!%p316_p8)  ;;  %v372_v61 = vld [vmem:[%s974_s15 + $0x10] sm:$0xff] (!%p316_p8) }
  0x28   : > { %v409_v33 = vsub.s32 (!%p316_p8), %v406_v31, %v408_v28  ;;  %v378_v42 = vld [vmem:[%s974_s15 + $0x40] sm:$0xff] (!%p316_p8)  ;;  %v379_v50 = vld [vmem:[%s974_s15 + $0x48] sm:$0xff] (!%p316_p8)  ;;  %v380_v62 = vld [vmem:[%s974_s15 + $0x50] sm:$0xff] (!%p316_p8) }
  0x29   : > { %v386_v51 = vld [vmem:[%s974_s15 + $0x80] sm:$0xff] (!%p316_p8)  ;;  %v387_v56 = vld [vmem:[%s974_s15 + $0x88] sm:$0xff] (!%p316_p8)  ;;  %v388_v7 = vld [vmem:[%s974_s15 + $0x90] sm:$0xff] (!%p316_p8) }
  0x2a   : > { %s1131_s17 = smov (!%p356_p9, %s826_s17), 1  ;;  %v410_v37 = vrot.slane %v746_v24, %v409_v33  ;;  %v417_v38 = vrot.slane %v403_v30, %v409_v33  ;;  %v435_v39 = vrot.slane %v747_v29, %v409_v33  ;;  %v442_v40 = vrot.slane %v428_v32, %v409_v33  ;;  %v373_v24 = vld [vmem:[%s974_s15 + $0x18] sm:$0xff] }
  0x2b   : > { %s743_s11 = sshll.u32 %s1131_s17, 2  ;;  %s752_s21 = sshll.u32 %s1131_s17, 6  ;;  %v381_v29 = vld [vmem:[%s974_s15 + $0x58] sm:$0xff] }
  0x2c   : > { %s359_s14 = scalar_lea.vmem %s1122_s3, %s743_s11  ;;  %v418_v45 = vcombine.high %v410_v37, %v410_v37  ;;  %v443_v46 = vcombine.high %v435_v39, %v435_v39  ;;  %v978_v47 = vrot.slane %v410_v37, %v471_v35  ;;  %v980_v48 = vrot.slane %v417_v38, %v471_v35  ;;  %v389_v30 = vld [vmem:[%s974_s15 + $0x98] sm:$0xff]  ;;  %s1034_s24 = scalar_lea.vmem %s1123_s4, %s752_s21 }
  0x2d   : > { %v748_v34 = vld.sshfl [vmem:[%s359_s14] sm:$0x13 pattern:$0x75316420]  ;;  %v985_v53 = vrot.slane %v435_v39, %v471_v35  ;;  %v987_v54 = vrot.slane %v442_v40, %v471_v35 }
  0x2e   : > { %v453_v36 = vcombine.high %v748_v34, %v748_v34  ;;  %v460_v43 = vrot.slane %v748_v34, %v409_v33  ;;  %v992_v57 = vrot.slane %v418_v45, %v471_v35  ;;  %v484_v58 = vmul.f32 %v978_v47, %v370_v41  ;;  %v374_v39 = vld [vmem:[%s974_s15 + $0x20] sm:$0xff] }
  0x2f   : > { %v492_v59 = vmul.f32 %v980_v48, %v378_v42  ;;  %v996_v60 = vrot.slane %v443_v46, %v471_v35  ;;  %v485_v1 = vmul.f32 %v978_v47, %v371_v49  ;;  %v493_v2 = vmul.f32 %v980_v48, %v379_v50  ;;  %v382_v40 = vld [vmem:[%s974_s15 + $0x60] sm:$0xff]  ;;  %v375_v46 = vld [vmem:[%s974_s15 + $0x28] sm:$0xff] }
  0x30   : > { %v467_v44 = vrot.slane %v453_v36, %v409_v33  ;;  %v468_v52 = vcombine.high %v460_v43, %v460_v43  ;;  %v989_v55 = vrot.slane %v460_v43, %v471_v35  ;;  %v500_v3 = vmul.f32 %v992_v57, %v386_v51  ;;  %v390_v45 = vld [vmem:[%s974_s15 + $0xa0] sm:$0xff] }
  0x31   : > { %v523_v4 = vadd.f32 %v985_v53, %v484_v58  ;;  %v531_v5 = vadd.f32 %v987_v54, %v492_v59  ;;  %v501_v6 = vmul.f32 %v992_v57, %v387_v56  ;;  %v524_v8 = vadd.f32 %v985_v53, %v485_v1 }
  0x32   : > { %v1000_v63 = vrot.slane %v467_v44, %v471_v35  ;;  %v1002_v0 = vrot.slane %v468_v52, %v471_v35  ;;  %v532_v9 = vadd.f32 %v987_v54, %v493_v2  ;;  %v486_v10 = vmul.f32 %v978_v47, %v372_v61 }
  0x33   : > { %v494_v11 = vmul.f32 %v980_v48, %v380_v62  ;;  %v539_v12 = vadd.f32 %v996_v60, %v500_v3  ;;  %v547_v13 = vmax.f32 %v523_v4, 0.0  ;;  %v555_v14 = vmax.f32 %v531_v5, 0.0  ;;  %v383_v62 = vld [vmem:[%s974_s15 + $0x68] sm:$0xff] }
  0x34   : > { %v540_v15 = vadd.f32 %v996_v60, %v501_v6  ;;  %v548_v16 = vmax.f32 %v524_v8, 0.0  ;;  %v556_v17 = vmax.f32 %v532_v9, 0.0  ;;  %v502_v18 = vmul.f32 %v992_v57, %v388_v7  ;;  %v391_v9 = vld [vmem:[%s974_s15 + $0xa8] sm:$0xff] }
  0x35   : > { %v525_v19 = vadd.f32 %v985_v53, %v486_v10  ;;  %v563_v20 = vmax.f32 %v539_v12, 0.0  ;;  %v586_v21 = vmul.f32 %v989_v55, %v547_v13  ;;  %v594_v22 = vmul.f32 %v1000_v63, %v555_v14  ;;  %v376_v14 = vld [vmem:[%s974_s15 + $0x30] sm:$0xff] }
  0x36   : > { %v564_v23 = vmax.f32 %v540_v15, 0.0  ;;  %v587_v25 = vmul.f32 %v989_v55, %v548_v16  ;;  %v595_v26 = vmul.f32 %v1000_v63, %v556_v17  ;;  %v533_v27 = vadd.f32 %v987_v54, %v494_v11 }
  0x37   : > { %v541_v28 = vadd.f32 %v996_v60, %v502_v18  ;;  %v602_v31 = vmul.f32 %v1002_v0, %v563_v20  ;;  %v610_v32 = vadd.f32 %v594_v22, %v586_v21  ;;  %v549_v34 = vmax.f32 %v525_v19, 0.0 }
  0x38   : > { %v603_v33 = vmul.f32 %v1002_v0, %v564_v23  ;;  %v612_v35 = vadd.f32 %v595_v26, %v587_v25  ;;  %v557_v36 = vmax.f32 %v533_v27, 0.0  ;;  %v487_v38 = vmul.f32 %v978_v47, %v373_v24  ;;  %v384_v23 = vld [vmem:[%s974_s15 + $0x70] sm:$0xff] }
  0x39   : > { %v565_v37 = vmax.f32 %v541_v28, 0.0  ;;  %v611_v41 = vadd.f32 %v610_v32, %v602_v31  ;;  %v588_v42 = vmul.f32 %v989_v55, %v549_v34  ;;  %v495_v43 = vmul.f32 %v980_v48, %v381_v29  ;;  %v392_v24 = vld [vmem:[%s974_s15 + $0xb0] sm:$0xff] }
  0x3a   : > { %v503_v44 = vmul.f32 %v992_v57, %v389_v30  ;;  %v613_v49 = vadd.f32 %v612_v35, %v603_v33  ;;  %v596_v50 = vmul.f32 %v1000_v63, %v557_v36  ;;  %v526_v52 = vadd.f32 %v985_v53, %v487_v38  ;;  %v377_v33 = vld [vmem:[%s974_s15 + $0x38] sm:$0xff] }
  0x3b   : > { %v604_v51 = vmul.f32 %v1002_v0, %v565_v37  ;;  %626 = vst [vmem:[%s1034_s24] sm:$0xff] %v611_v41  ;;  %v534_v56 = vadd.f32 %v987_v54, %v495_v43  ;;  %v488_v59 = vmul.f32 %v978_v47, %v374_v39  ;;  %v496_v61 = vmul.f32 %v980_v48, %v382_v40  ;;  %v385_v38 = vld [vmem:[%s974_s15 + $0x78] sm:$0xff] }
  0x3c   : > { %v542_v58 = vadd.f32 %v996_v60, %v503_v44  ;;  %627 = vst [vmem:[%s1034_s24 + $0x8] sm:$0xff] %v613_v49  ;;  %v614_v1 = vadd.f32 %v596_v50, %v588_v42  ;;  %v550_v2 = vmax.f32 %v526_v52, 0.0  ;;  %v504_v3 = vmul.f32 %v992_v57, %v390_v45  ;;  %v393_v43 = vld [vmem:[%s974_s15 + $0xb8] sm:$0xff] }
  0x3d   : > { %v489_v4 = vmul.f32 %v978_v47, %v375_v46  ;;  %v558_v5 = vmax.f32 %v534_v56, 0.0  ;;  %v527_v7 = vadd.f32 %v985_v53, %v488_v59  ;;  %v535_v8 = vadd.f32 %v987_v54, %v496_v61 }
  0x3e   : > { %v566_v6 = vmax.f32 %v542_v58, 0.0  ;;  %v615_v10 = vadd.f32 %v614_v1, %v604_v51  ;;  %v589_v11 = vmul.f32 %v989_v55, %v550_v2  ;;  %v543_v12 = vadd.f32 %v996_v60, %v504_v3 }
  0x3f   : > { %v497_v13 = vmul.f32 %v980_v48, %v383_v62  ;;  %v597_v15 = vmul.f32 %v1000_v63, %v558_v5  ;;  %v551_v17 = vmax.f32 %v527_v7, 0.0  ;;  %v559_v18 = vmax.f32 %v535_v8, 0.0 }
  0x40   : > { %v605_v16 = vmul.f32 %v1002_v0, %v566_v6  ;;  %628 = vst [vmem:[%s1034_s24 + $0x10] sm:$0xff] %v615_v10  ;;  %v567_v19 = vmax.f32 %v543_v12, 0.0  ;;  %v505_v20 = vmul.f32 %v992_v57, %v391_v9  ;;  %v528_v21 = vadd.f32 %v985_v53, %v489_v4 }
  0x41   : > { %v536_v22 = vadd.f32 %v987_v54, %v497_v13  ;;  %v616_v25 = vadd.f32 %v597_v15, %v589_v11  ;;  %v590_v26 = vmul.f32 %v989_v55, %v551_v17  ;;  %v598_v27 = vmul.f32 %v1000_v63, %v559_v18 }
  0x42   : > { %v490_v28 = vmul.f32 %v978_v47, %v376_v14  ;;  %v606_v29 = vmul.f32 %v1002_v0, %v567_v19  ;;  %v544_v30 = vadd.f32 %v996_v60, %v505_v20  ;;  %v552_v31 = vmax.f32 %v528_v21, 0.0 }
  0x43   : > { %v560_v32 = vmax.f32 %v536_v22, 0.0  ;;  %v617_v34 = vadd.f32 %v616_v25, %v605_v16  ;;  %v618_v35 = vadd.f32 %v598_v27, %v590_v26  ;;  %v498_v36 = vmul.f32 %v980_v48, %v384_v23 }
  0x44   : > { %v506_v37 = vmul.f32 %v992_v57, %v392_v24  ;;  %v568_v39 = vmax.f32 %v544_v30, 0.0  ;;  %v591_v40 = vmul.f32 %v989_v55, %v552_v31  ;;  %v529_v42 = vadd.f32 %v985_v53, %v490_v28 }
  0x45   : > { %v599_v41 = vmul.f32 %v1000_v63, %v560_v32  ;;  %629 = vst [vmem:[%s1034_s24 + $0x18] sm:$0xff] %v617_v34  ;;  %v619_v44 = vadd.f32 %v618_v35, %v606_v29  ;;  %v537_v45 = vadd.f32 %v987_v54, %v498_v36  ;;  %v491_v49 = vmul.f32 %v978_v47, %v377_v33 }
  0x46   : > { %v545_v46 = vadd.f32 %v996_v60, %v506_v37  ;;  %v607_v50 = vmul.f32 %v1002_v0, %v568_v39  ;;  %v553_v52 = vmax.f32 %v529_v42, 0.0  ;;  %v499_v56 = vmul.f32 %v980_v48, %v385_v38 }
  0x47   : > { %v620_v51 = vadd.f32 %v599_v41, %v591_v40  ;;  %630 = vst [vmem:[%s1034_s24 + $0x20] sm:$0xff] %v619_v44  ;;  %v561_v58 = vmax.f32 %v537_v45, 0.0  ;;  %v507_v61 = vmul.f32 %v992_v57, %v393_v43  ;;  %v530_v62 = vadd.f32 %v985_v53, %v491_v49 }
  0x48   : > { %v569_v59 = vmax.f32 %v545_v46, 0.0  ;;  %v592_v2 = vmul.f32 %v989_v55, %v553_v52  ;;  %v538_v47 = vadd.f32 %v987_v54, %v499_v56 }
  0x49   : > { %v621_v1 = vadd.f32 %v620_v51, %v607_v50  ;;  %v600_v3 = vmul.f32 %v1000_v63, %v561_v58  ;;  %v546_v48 = vadd.f32 %v996_v60, %v507_v61  ;;  %v554_v5 = vmax.f32 %v530_v62, 0.0 }
  0x4a   : > { %v608_v4 = vmul.f32 %v1002_v0, %v569_v59  ;;  %v562_v6 = vmax.f32 %v538_v47, 0.0 }
  0x4b   : > { %631 = vst [vmem:[%s1034_s24 + $0x28] sm:$0xff] %v621_v1  ;;  %v622_v7 = vadd.f32 %v600_v3, %v592_v2  ;;  %v570_v57 = vmax.f32 %v546_v48, 0.0  ;;  %v593_v53 = vmul.f32 %v989_v55, %v554_v5 }
  0x4c   : > { %v601_v8 = vmul.f32 %v1000_v63, %v562_v6 }
  0x4d   : > { %v623_v9 = vadd.f32 %v622_v7, %v608_v4  ;;  %v609_v10 = vmul.f32 %v1002_v0, %v570_v57 }
  0x4e   : > { %v624_v54 = vadd.f32 %v601_v8, %v593_v53 }
  0x4f   : > { %632 = vst [vmem:[%s1034_s24 + $0x30] sm:$0xff] %v623_v9 }
  0x50   : > { %v625_v11 = vadd.f32 %v624_v54, %v609_v10 }
  0x52   : > { %633 = vst [vmem:[%s1034_s24 + $0x38] sm:$0xff] %v625_v11 }
  0x53 PF: > { %s14_s19 = sadd.s32 1, %s834_s19   ;;  %s1124_s15 = smov %s822_s16 }
  0x54   : > { %p11_p10 = scmp.ge.s32.totalorder %s14_s19, 4   ;;  %s1125_s16 = smov %s897_s23 }
  0x55   : > { %s1126_s17 = smov %s830_s18  ;;  %s1127_s18 = smov %s1129_s20 }
  0x56   :  { %13 = sbr.rel (!%p11_p10) target bundleno = 3 (0x3), region = 112 }

</bundles_post_ra>
